<compile_context>
chip_gen: v7x
topology: tpu7x:2x2x1
jax: 0.10.0
libtpu: 0.0.40
codegen_flags: <defaults>
</compile_context>

<pallas_src>
import functools

import jax
import jax.numpy as jnp
from jax.experimental import pallas as pl
from jax.experimental.pallas import tpu as pltpu

# ---------------- config (small, consistent with the module) ----------------
BATCH = 2
IN_CH = 3
IMG = 32
PATCH = 16
EMBED = 64
HEADS = 2
HEAD_DIM = EMBED // HEADS
DEPTH = 2
MLP_HIDDEN = 4 * EMBED          # mlp_ratio = 4
N_PATCH = (IMG // PATCH) ** 2   # 4
TOKENS = N_PATCH + 1            # +CLS = 5
CPP = IN_CH * PATCH * PATCH     # 768
LN_EPS = 1e-6                   # timm ViT uses LayerNorm(eps=1e-6)
NEG_INF = -1e30                 # additive mask for cross-image attention


# ------------------------------ kernel helpers -------------------------------
def _layernorm(x, gamma, beta, eps=LN_EPS):
    mu = jnp.mean(x, axis=-1, keepdims=True)
    xc = x - mu
    var = jnp.mean(xc * xc, axis=-1, keepdims=True)
    return xc * jax.lax.rsqrt(var + eps) * gamma + beta


def _gelu_exact(x):
    # nn.GELU() default (erf-based, exact)
    return 0.5 * x * (1.0 + jax.lax.erf(x * 0.7071067811865475))


# ------------------------------ fused Pallas kernel --------------------------
def dino_fused_kernel(patches_ref, addb_ref, mask_ref, patch_w_ref, ln_ref,
                      qkv_w_ref, proj_w_ref, fc1_w_ref, fc2_w_ref, bias_ref,
                      norm_ref, o_ref, *, bps):
    """One grid step = `bps` images, stacked along the token (M) axis."""
    f32 = jnp.float32
    bf16 = jnp.bfloat16
    scale = HEAD_DIM ** -0.5

    # ---- patch embedding (Conv2d(C, D, P, stride=P) as matmul).  CLS rows of
    # the input are zero; CLS content / pos-embed / patch bias live in addb.
    x = (jnp.dot(patches_ref[...], patch_w_ref[...],
                 preferred_element_type=f32)
         + addb_ref[...])                                     # (BT, D) f32

    mask = mask_ref[...]                                      # (BT, BT) f32

    # ---- transformer blocks; weights VMEM-resident, static depth loop ----
    for d in range(DEPTH):
        ln = ln_ref[d]                                        # (4, D)
        bs = bias_ref[d]                                      # (4, MLP_HIDDEN)

        # attention branch: x = x + proj(MHSA(LN1(x)))
        h = _layernorm(x, ln[0:1, :], ln[1:2, :])
        qkv = (jnp.dot(h.astype(bf16), qkv_w_ref[d],
                       preferred_element_type=f32)
               + bs[0:1, 0:3 * EMBED])                        # (BT, 3D)

        ctx_heads = []
        for hh in range(HEADS):                               # static unroll
            q = qkv[:, hh * HEAD_DIM:(hh + 1) * HEAD_DIM]
            k = qkv[:, EMBED + hh * HEAD_DIM:EMBED + (hh + 1) * HEAD_DIM]
            v = qkv[:, 2 * EMBED + hh * HEAD_DIM:
                    2 * EMBED + (hh + 1) * HEAD_DIM]
            # contract last dims of q/k -> no materialized transpose;
            # block-diagonal mask keeps attention per-image.
            logits = jax.lax.dot_general(
                q, k, (((1,), (1,)), ((), ())),
                preferred_element_type=f32) * scale + mask    # (BT, BT)
            logits = logits - jnp.max(logits, axis=-1, keepdims=True)
            p = jnp.exp(logits)
            p = p * pl.reciprocal(jnp.sum(p, axis=-1, keepdims=True),
                                  approx=True)
            ctx_heads.append(jnp.dot(p, v, preferred_element_type=f32))
        ctx = jnp.concatenate(ctx_heads, axis=-1)             # (BT, D)

        attn = (jnp.dot(ctx.astype(bf16), proj_w_ref[d],
                        preferred_element_type=f32)
                + bs[1:2, 0:EMBED])
        x = x + attn

        # MLP branch: x = x + fc2(GELU(fc1(LN2(x))))
        h2 = _layernorm(x, ln[2:3, :], ln[3:4, :])
        h2 = (jnp.dot(h2.astype(bf16), fc1_w_ref[d],
                      preferred_element_type=f32)
              + bs[2:3, :])
        h2 = _gelu_exact(h2)
        h2 = (jnp.dot(h2.astype(bf16), fc2_w_ref[d],
                      preferred_element_type=f32)
              + bs[3:4, 0:EMBED])
        x = x + h2

    # ---- final LayerNorm, pooled ('token') feature = CLS token per image ----
    norm_gb = norm_ref[...]                                   # (2, D)
    cls = jnp.concatenate(
        [x[b * TOKENS:b * TOKENS + 1, :] for b in range(bps)], axis=0)
    o_ref[...] = _layernorm(cls, norm_gb[0:1, :], norm_gb[1:2, :])


# ------------------------------ pallas_call wrapper ---------------------------
def _const_spec(arr):
    zeros = (0,) * arr.ndim
    return pl.BlockSpec(arr.shape, lambda i, _z=zeros: _z)


def dino_forward(x, prep, batch_per_step=None):
    """batch_per_step=None -> whole batch in a single grid step (best for the
    single-TC v5e/v6e; for v7x with larger B set batch_per_step=B//2)."""
    B = x.shape[0]
    bps = B if batch_per_step is None else batch_per_step
    assert B % bps == 0
    steps = B // bps
    bt = bps * TOKENS

    # patchify + prepend a zero "CLS row" per image; flatten to (B*T, CPP).
    p = patchify(x, PATCH)                                    # (B, N, CPP)
    p = jnp.concatenate([jnp.zeros((B, 1, CPP), p.dtype), p], axis=1)
    patches_ext = p.reshape(B * TOKENS, CPP).astype(jnp.bfloat16)

    # additive tensor: CLS rows get cls_token+pos[0]; patch rows get
    # pos[1:]+patch_bias.  Same for every image -> constant across steps.
    add_bias = jnp.tile(prep["add_row"], (bps, 1))            # (bt, D) f32

    # block-diagonal attention mask (0 within an image, -1e30 across images).
    ids = jnp.arange(bt, dtype=jnp.int32) // TOKENS
    mask = jnp.where(ids[:, None] == ids[None, :], 0.0, NEG_INF
                     ).astype(jnp.float32)

    ws = (prep["patch_w"], prep["ln"], prep["qkv_w"], prep["proj_w"],
          prep["fc1_w"], prep["fc2_w"], prep["biases"], prep["norm_gb"])

    in_specs = [pl.BlockSpec((bt, CPP), lambda i: (i, 0)),
                _const_spec(add_bias), _const_spec(mask)]
    in_specs += [_const_spec(w) for w in ws]

    kernel = functools.partial(dino_fused_kernel, bps=bps)
    return pl.pallas_call(
        kernel,
        out_shape=jax.ShapeDtypeStruct((B, EMBED), jnp.float32),
        grid=(steps,),
        in_specs=in_specs,
        out_specs=pl.BlockSpec((bps, EMBED), lambda i: (i, 0)),
        compiler_params=pltpu.CompilerParams(
            dimension_semantics=("parallel",)),
    )(patches_ext, add_bias, mask, *ws)


# ------------------------------ glue (plain JAX) ------------------------------
def patchify(x, patch):
    # NCHW -> (B, N, C*P*P), flattening in (C, kh, kw) order to match Conv2d.
    B, C, H, W = x.shape
    gh, gw = H // patch, W // patch
    x = x.reshape(B, C, gh, patch, gw, patch)
    x = x.transpose(0, 2, 4, 1, 3, 5)                         # (B, gh, gw, C, p, p)
    return x.reshape(B, gh * gw, C * patch * patch)


def init_params(key):
    std = 0.02
    ks = iter(jax.random.split(key, 8 + DEPTH * 8))

    def nrm(shape):
        return std * jax.random.normal(next(ks), shape, dtype=jnp.float32)

    params = {
        "patch_w": nrm((CPP, EMBED)),
        "patch_b": jnp.zeros((1, EMBED), jnp.float32),
        "cls_token": nrm((1, 1, EMBED)),
        "pos_embed": nrm((1, TOKENS, EMBED)),
        "norm_g": jnp.ones((1, EMBED), jnp.float32),
        "norm_b": jnp.zeros((1, EMBED), jnp.float32),
        "blocks": [],
    }
    for _ in range(DEPTH):
        blk = {
            "ln1_g": jnp.ones((1, EMBED), jnp.float32),
            "ln1_b": jnp.zeros((1, EMBED), jnp.float32),
            "qkv_w": nrm((EMBED, 3 * EMBED)),
            "qkv_b": jnp.zeros((3 * EMBED,), jnp.float32),
            "proj_w": nrm((EMBED, EMBED)),
            "proj_b": jnp.zeros((1, EMBED), jnp.float32),
            "ln2_g": jnp.ones((1, EMBED), jnp.float32),
            "ln2_b": jnp.zeros((1, EMBED), jnp.float32),
            "fc1_w": nrm((EMBED, MLP_HIDDEN)),
            "fc1_b": jnp.zeros((1, MLP_HIDDEN), jnp.float32),
            "fc2_w": nrm((MLP_HIDDEN, EMBED)),
            "fc2_b": jnp.zeros((1, EMBED), jnp.float32),
        }
        params["blocks"].append(blk)
    return params


def prepare_params(params):
    """One-time re-layout: stack per-depth weights (kept wide, NOT split per
    head), merge tiny per-layer LN/bias tensors, cast matmul weights to bf16,
    and fold cls_token / pos_embed / patch bias into one additive row block."""
    bf16 = jnp.bfloat16

    def pad_bias(v):
        v = v.reshape(1, -1)
        return jnp.pad(v, ((0, 0), (0, MLP_HIDDEN - v.shape[1])))

    ln, qkvw, projw, f1w, f2w, biases = [], [], [], [], [], []
    for blk in params["blocks"]:
        ln.append(jnp.concatenate(
            [blk["ln1_g"], blk["ln1_b"], blk["ln2_g"], blk["ln2_b"]], axis=0))
        qkvw.append(blk["qkv_w"])
        projw.append(blk["proj_w"])
        f1w.append(blk["fc1_w"])
        f2w.append(blk["fc2_w"])
        biases.append(jnp.concatenate(
            [pad_bias(blk["qkv_b"]), pad_bias(blk["proj_b"]),
             pad_bias(blk["fc1_b"]), pad_bias(blk["fc2_b"])], axis=0))

    # per-image additive rows: CLS gets cls_token + pos[0]; patch tokens get
    # pos[1:] + patch_bias (the kernel's zero CLS input row skips patch_bias).
    add_row = jnp.concatenate(
        [params["cls_token"][0] + params["pos_embed"][0, 0:1, :],
         params["pos_embed"][0, 1:, :] + params["patch_b"]], axis=0)  # (T, D)

    return {
        "patch_w": params["patch_w"].astype(bf16),            # (CPP, D)
        "add_row": add_row,                                   # (T, D)   f32
        "ln": jnp.stack(ln, axis=0),                          # (DEPTH, 4, D)
        "qkv_w": jnp.stack(qkvw, axis=0).astype(bf16),        # (DEPTH, D, 3D)
        "proj_w": jnp.stack(projw, axis=0).astype(bf16),      # (DEPTH, D, D)
        "fc1_w": jnp.stack(f1w, axis=0).astype(bf16),         # (DEPTH, D, 4D)
        "fc2_w": jnp.stack(f2w, axis=0).astype(bf16),         # (DEPTH, 4D, D)
        "biases": jnp.stack(biases, axis=0),                  # (DEPTH, 4, 4D)
        "norm_gb": jnp.concatenate(
            [params["norm_g"], params["norm_b"]], axis=0),    # (2, D)
    }


# ----------------------------------- main -------------------------------------
if __name__ == "__main__":
    key = jax.random.PRNGKey(0)
    k_x, k_p = jax.random.split(key)
    x = jax.random.normal(k_x, (BATCH, IN_CH, IMG, IMG), dtype=jnp.float32)
    prep = prepare_params(init_params(k_p))

    feats = dino_forward(x, prep)                             # (BATCH, EMBED)
    jax.block_until_ready(feats)
    assert feats.shape == (BATCH, EMBED) and feats.dtype == jnp.float32
    assert bool(jnp.all(jnp.isfinite(feats)))
    print("KERNEL_OK")
</pallas_src>

<mosaic_0001>
module attributes {stable_mosaic.version = 11 : i64} {
  func.func @dino_fused_kernel(%arg0: i32, %arg1: memref<10x768xbf16, #tpu.memory_space<vmem>>, %arg2: memref<10x64xf32, #tpu.memory_space<vmem>>, %arg3: memref<10x10xf32, #tpu.memory_space<vmem>>, %arg4: memref<768x64xbf16, #tpu.memory_space<vmem>>, %arg5: memref<2x4x64xf32, #tpu.memory_space<vmem>>, %arg6: memref<2x64x192xbf16, #tpu.memory_space<vmem>>, %arg7: memref<2x64x64xbf16, #tpu.memory_space<vmem>>, %arg8: memref<2x64x256xbf16, #tpu.memory_space<vmem>>, %arg9: memref<2x256x64xbf16, #tpu.memory_space<vmem>>, %arg10: memref<2x4x256xf32, #tpu.memory_space<vmem>>, %arg11: memref<2x64xf32, #tpu.memory_space<vmem>>, %arg12: memref<2x64xf32, #tpu.memory_space<vmem>>) attributes {dimension_semantics = [#tpu.dimension_semantics<parallel>], iteration_bounds = array<i64: 1>, scalar_prefetch = 0 : i64, scratch_operands = 0 : i64, tpu.core_type = #tpu.core_type<tc>, window_params = [{transform_indices = @transform_0, window_bounds = array<i64: 10, 768>}, {pipeline_mode = #tpu.pipeline_mode<synchronous>, transform_indices = @transform_1, window_bounds = array<i64: 10, 64>}, {pipeline_mode = #tpu.pipeline_mode<synchronous>, transform_indices = @transform_2, window_bounds = array<i64: 10, 10>}, {pipeline_mode = #tpu.pipeline_mode<synchronous>, transform_indices = @transform_3, window_bounds = array<i64: 768, 64>}, {pipeline_mode = #tpu.pipeline_mode<synchronous>, transform_indices = @transform_4, window_bounds = array<i64: 2, 4, 64>}, {pipeline_mode = #tpu.pipeline_mode<synchronous>, transform_indices = @transform_5, window_bounds = array<i64: 2, 64, 192>}, {pipeline_mode = #tpu.pipeline_mode<synchronous>, transform_indices = @transform_6, window_bounds = array<i64: 2, 64, 64>}, {pipeline_mode = #tpu.pipeline_mode<synchronous>, transform_indices = @transform_7, window_bounds = array<i64: 2, 64, 256>}, {pipeline_mode = #tpu.pipeline_mode<synchronous>, transform_indices = @transform_8, window_bounds = array<i64: 2, 256, 64>}, {pipeline_mode = #tpu.pipeline_mode<synchronous>, transform_indices = @transform_9, window_bounds = array<i64: 2, 4, 256>}, {pipeline_mode = #tpu.pipeline_mode<synchronous>, transform_indices = @transform_10, window_bounds = array<i64: 2, 64>}, {transform_indices = @transform_11, window_bounds = array<i64: 2, 64>}]} {
    %c0 = arith.constant 0 : index
    %c0_0 = arith.constant 0 : index
    %0 = vector.load %arg1[%c0, %c0_0] : memref<10x768xbf16, #tpu.memory_space<vmem>>, vector<10x768xbf16>
    %c0_1 = arith.constant 0 : index
    %c0_2 = arith.constant 0 : index
    %1 = vector.load %arg4[%c0_1, %c0_2] : memref<768x64xbf16, #tpu.memory_space<vmem>>, vector<768x64xbf16>
    %cst = arith.constant dense<0.000000e+00> : vector<10x64xf32>
    %2 = tpu.matmul %0, %1, %cst {dimension_numbers = #tpu.dot_dimension_numbers<[1], [0], [0], [1], [0, 0, 1, 1], [], []>} : vector<10x768xbf16>, vector<768x64xbf16>, vector<10x64xf32> -> vector<10x64xf32>
    %c0_3 = arith.constant 0 : index
    %c0_4 = arith.constant 0 : index
    %3 = vector.load %arg2[%c0_3, %c0_4] : memref<10x64xf32, #tpu.memory_space<vmem>>, vector<10x64xf32>
    %4 = arith.addf %2, %3 : vector<10x64xf32>
    %c0_5 = arith.constant 0 : index
    %c0_6 = arith.constant 0 : index
    %5 = vector.load %arg3[%c0_5, %c0_6] : memref<10x10xf32, #tpu.memory_space<vmem>>, vector<10x10xf32>
    %c0_7 = arith.constant 0 : index
    %c0_8 = arith.constant 0 : index
    %c0_9 = arith.constant 0 : index
    %6 = vector.load %arg5[%c0_7, %c0_8, %c0_9] : memref<2x4x64xf32, #tpu.memory_space<vmem>>, vector<1x4x64xf32>
    %7 = vector.shape_cast %6 : vector<1x4x64xf32> to vector<4x64xf32>
    %c0_10 = arith.constant 0 : index
    %c0_11 = arith.constant 0 : index
    %c0_12 = arith.constant 0 : index
    %8 = vector.load %arg10[%c0_10, %c0_11, %c0_12] : memref<2x4x256xf32, #tpu.memory_space<vmem>>, vector<1x4x256xf32>
    %9 = vector.shape_cast %8 : vector<1x4x256xf32> to vector<4x256xf32>
    %10 = vector.extract_strided_slice %7 {offsets = [0, 0], sizes = [1, 64], strides = [1, 1]} : vector<4x64xf32> to vector<1x64xf32>
    %11 = vector.extract_strided_slice %7 {offsets = [1, 0], sizes = [1, 64], strides = [1, 1]} : vector<4x64xf32> to vector<1x64xf32>
    %cst_13 = arith.constant dense<0.000000e+00> : vector<10xf32>
    %12 = vector.multi_reduction <add>, %4, %cst_13 [1] : vector<10x64xf32> to vector<10xf32>
    %13 = vector.shape_cast %12 : vector<10xf32> to vector<10x1xf32>
    %cst_14 = arith.constant 6.400000e+01 : f32
    %14 = vector.broadcast %cst_14 : f32 to vector<10x1xf32>
    %15 = arith.divf %13, %14 : vector<10x1xf32>
    %16 = vector.broadcast %15 : vector<10x1xf32> to vector<10x64xf32>
    %17 = arith.subf %4, %16 : vector<10x64xf32>
    %18 = arith.mulf %17, %17 : vector<10x64xf32>
    %cst_15 = arith.constant dense<0.000000e+00> : vector<10xf32>
    %19 = vector.multi_reduction <add>, %18, %cst_15 [1] : vector<10x64xf32> to vector<10xf32>
    %20 = vector.shape_cast %19 : vector<10xf32> to vector<10x1xf32>
    %cst_16 = arith.constant 6.400000e+01 : f32
    %21 = vector.broadcast %cst_16 : f32 to vector<10x1xf32>
    %22 = arith.divf %20, %21 : vector<10x1xf32>
    %cst_17 = arith.constant 9.99999997E-7 : f32
    %23 = vector.broadcast %cst_17 : f32 to vector<10x1xf32>
    %24 = arith.addf %22, %23 : vector<10x1xf32>
    %25 = math.rsqrt %24 : vector<10x1xf32>
    %26 = vector.broadcast %25 : vector<10x1xf32> to vector<10x64xf32>
    %27 = arith.mulf %17, %26 : vector<10x64xf32>
    %28 = vector.broadcast %10 : vector<1x64xf32> to vector<10x64xf32>
    %29 = arith.mulf %27, %28 : vector<10x64xf32>
    %30 = vector.broadcast %11 : vector<1x64xf32> to vector<10x64xf32>
    %31 = arith.addf %29, %30 : vector<10x64xf32>
    %32 = arith.truncf %31 : vector<10x64xf32> to vector<10x64xbf16>
    %c0_18 = arith.constant 0 : index
    %c0_19 = arith.constant 0 : index
    %c0_20 = arith.constant 0 : index
    %33 = vector.load %arg6[%c0_18, %c0_19, %c0_20] : memref<2x64x192xbf16, #tpu.memory_space<vmem>>, vector<1x64x192xbf16>
    %34 = vector.shape_cast %33 : vector<1x64x192xbf16> to vector<64x192xbf16>
    %cst_21 = arith.constant dense<0.000000e+00> : vector<10x192xf32>
    %35 = tpu.matmul %32, %34, %cst_21 {dimension_numbers = #tpu.dot_dimension_numbers<[1], [0], [0], [1], [0, 0, 1, 1], [], []>} : vector<10x64xbf16>, vector<64x192xbf16>, vector<10x192xf32> -> vector<10x192xf32>
    %36 = vector.extract_strided_slice %9 {offsets = [0, 0], sizes = [1, 192], strides = [1, 1]} : vector<4x256xf32> to vector<1x192xf32>
    %37 = vector.broadcast %36 : vector<1x192xf32> to vector<10x192xf32>
    %38 = arith.addf %35, %37 : vector<10x192xf32>
    %39 = vector.extract_strided_slice %38 {offsets = [0, 0], sizes = [10, 32], strides = [1, 1]} : vector<10x192xf32> to vector<10x32xf32>
    %40 = vector.extract_strided_slice %38 {offsets = [0, 64], sizes = [10, 32], strides = [1, 1]} : vector<10x192xf32> to vector<10x32xf32>
    %41 = vector.extract_strided_slice %38 {offsets = [0, 128], sizes = [10, 32], strides = [1, 1]} : vector<10x192xf32> to vector<10x32xf32>
    %cst_22 = arith.constant dense<0.000000e+00> : vector<10x10xf32>
    %42 = tpu.matmul %39, %40, %cst_22 {dimension_numbers = #tpu.dot_dimension_numbers<[1], [1], [0], [0], [0, 0, 1, 0], [], []>} : vector<10x32xf32>, vector<10x32xf32>, vector<10x10xf32> -> vector<10x10xf32>
    %cst_23 = arith.constant 0.176776692 : f32
    %43 = vector.broadcast %cst_23 : f32 to vector<10x10xf32>
    %44 = arith.mulf %42, %43 : vector<10x10xf32>
    %45 = arith.addf %44, %5 : vector<10x10xf32>
    %cst_24 = arith.constant dense<0xFF800000> : vector<10xf32>
    %46 = vector.multi_reduction <maximumf>, %45, %cst_24 [1] : vector<10x10xf32> to vector<10xf32>
    %47 = vector.shape_cast %46 : vector<10xf32> to vector<10x1xf32>
    %48 = vector.broadcast %47 : vector<10x1xf32> to vector<10x10xf32>
    %49 = arith.subf %45, %48 : vector<10x10xf32>
    %50 = math.exp %49 : vector<10x10xf32>
    %cst_25 = arith.constant dense<0.000000e+00> : vector<10xf32>
    %51 = vector.multi_reduction <add>, %50, %cst_25 [1] : vector<10x10xf32> to vector<10xf32>
    %52 = vector.shape_cast %51 : vector<10xf32> to vector<10x1xf32>
    %53 = tpu.reciprocal %52 {approx = true} : vector<10x1xf32> -> vector<10x1xf32>
    %54 = vector.broadcast %53 : vector<10x1xf32> to vector<10x10xf32>
    %55 = arith.mulf %50, %54 : vector<10x10xf32>
    %cst_26 = arith.constant dense<0.000000e+00> : vector<10x32xf32>
    %56 = tpu.matmul %55, %41, %cst_26 {dimension_numbers = #tpu.dot_dimension_numbers<[1], [0], [0], [1], [0, 0, 1, 1], [], []>} : vector<10x10xf32>, vector<10x32xf32>, vector<10x32xf32> -> vector<10x32xf32>
    %57 = vector.extract_strided_slice %38 {offsets = [0, 32], sizes = [10, 32], strides = [1, 1]} : vector<10x192xf32> to vector<10x32xf32>
    %58 = vector.extract_strided_slice %38 {offsets = [0, 96], sizes = [10, 32], strides = [1, 1]} : vector<10x192xf32> to vector<10x32xf32>
    %59 = vector.extract_strided_slice %38 {offsets = [0, 160], sizes = [10, 32], strides = [1, 1]} : vector<10x192xf32> to vector<10x32xf32>
    %cst_27 = arith.constant dense<0.000000e+00> : vector<10x10xf32>
    %60 = tpu.matmul %57, %58, %cst_27 {dimension_numbers = #tpu.dot_dimension_numbers<[1], [1], [0], [0], [0, 0, 1, 0], [], []>} : vector<10x32xf32>, vector<10x32xf32>, vector<10x10xf32> -> vector<10x10xf32>
    %cst_28 = arith.constant 0.176776692 : f32
    %61 = vector.broadcast %cst_28 : f32 to vector<10x10xf32>
    %62 = arith.mulf %60, %61 : vector<10x10xf32>
    %63 = arith.addf %62, %5 : vector<10x10xf32>
    %cst_29 = arith.constant dense<0xFF800000> : vector<10xf32>
    %64 = vector.multi_reduction <maximumf>, %63, %cst_29 [1] : vector<10x10xf32> to vector<10xf32>
    %65 = vector.shape_cast %64 : vector<10xf32> to vector<10x1xf32>
    %66 = vector.broadcast %65 : vector<10x1xf32> to vector<10x10xf32>
    %67 = arith.subf %63, %66 : vector<10x10xf32>
    %68 = math.exp %67 : vector<10x10xf32>
    %cst_30 = arith.constant dense<0.000000e+00> : vector<10xf32>
    %69 = vector.multi_reduction <add>, %68, %cst_30 [1] : vector<10x10xf32> to vector<10xf32>
    %70 = vector.shape_cast %69 : vector<10xf32> to vector<10x1xf32>
    %71 = tpu.reciprocal %70 {approx = true} : vector<10x1xf32> -> vector<10x1xf32>
    %72 = vector.broadcast %71 : vector<10x1xf32> to vector<10x10xf32>
    %73 = arith.mulf %68, %72 : vector<10x10xf32>
    %cst_31 = arith.constant dense<0.000000e+00> : vector<10x32xf32>
    %74 = tpu.matmul %73, %59, %cst_31 {dimension_numbers = #tpu.dot_dimension_numbers<[1], [0], [0], [1], [0, 0, 1, 1], [], []>} : vector<10x10xf32>, vector<10x32xf32>, vector<10x32xf32> -> vector<10x32xf32>
    %75 = tpu.concatenate %56, %74 in 1 : vector<10x32xf32>, vector<10x32xf32> -> vector<10x64xf32>
    %76 = arith.truncf %75 : vector<10x64xf32> to vector<10x64xbf16>
    %c0_32 = arith.constant 0 : index
    %c0_33 = arith.constant 0 : index
    %c0_34 = arith.constant 0 : index
    %77 = vector.load %arg7[%c0_32, %c0_33, %c0_34] : memref<2x64x64xbf16, #tpu.memory_space<vmem>>, vector<1x64x64xbf16>
    %78 = vector.shape_cast %77 : vector<1x64x64xbf16> to vector<64x64xbf16>
    %cst_35 = arith.constant dense<0.000000e+00> : vector<10x64xf32>
    %79 = tpu.matmul %76, %78, %cst_35 {dimension_numbers = #tpu.dot_dimension_numbers<[1], [0], [0], [1], [0, 0, 1, 1], [], []>} : vector<10x64xbf16>, vector<64x64xbf16>, vector<10x64xf32> -> vector<10x64xf32>
    %80 = vector.extract_strided_slice %9 {offsets = [1, 0], sizes = [1, 64], strides = [1, 1]} : vector<4x256xf32> to vector<1x64xf32>
    %81 = vector.broadcast %80 : vector<1x64xf32> to vector<10x64xf32>
    %82 = arith.addf %79, %81 : vector<10x64xf32>
    %83 = arith.addf %4, %82 : vector<10x64xf32>
    %84 = vector.extract_strided_slice %7 {offsets = [2, 0], sizes = [1, 64], strides = [1, 1]} : vector<4x64xf32> to vector<1x64xf32>
    %85 = vector.extract_strided_slice %7 {offsets = [3, 0], sizes = [1, 64], strides = [1, 1]} : vector<4x64xf32> to vector<1x64xf32>
    %cst_36 = arith.constant dense<0.000000e+00> : vector<10xf32>
    %86 = vector.multi_reduction <add>, %83, %cst_36 [1] : vector<10x64xf32> to vector<10xf32>
    %87 = vector.shape_cast %86 : vector<10xf32> to vector<10x1xf32>
    %cst_37 = arith.constant 6.400000e+01 : f32
    %88 = vector.broadcast %cst_37 : f32 to vector<10x1xf32>
    %89 = arith.divf %87, %88 : vector<10x1xf32>
    %90 = vector.broadcast %89 : vector<10x1xf32> to vector<10x64xf32>
    %91 = arith.subf %83, %90 : vector<10x64xf32>
    %92 = arith.mulf %91, %91 : vector<10x64xf32>
    %cst_38 = arith.constant dense<0.000000e+00> : vector<10xf32>
    %93 = vector.multi_reduction <add>, %92, %cst_38 [1] : vector<10x64xf32> to vector<10xf32>
    %94 = vector.shape_cast %93 : vector<10xf32> to vector<10x1xf32>
    %cst_39 = arith.constant 6.400000e+01 : f32
    %95 = vector.broadcast %cst_39 : f32 to vector<10x1xf32>
    %96 = arith.divf %94, %95 : vector<10x1xf32>
    %cst_40 = arith.constant 9.99999997E-7 : f32
    %97 = vector.broadcast %cst_40 : f32 to vector<10x1xf32>
    %98 = arith.addf %96, %97 : vector<10x1xf32>
    %99 = math.rsqrt %98 : vector<10x1xf32>
    %100 = vector.broadcast %99 : vector<10x1xf32> to vector<10x64xf32>
    %101 = arith.mulf %91, %100 : vector<10x64xf32>
    %102 = vector.broadcast %84 : vector<1x64xf32> to vector<10x64xf32>
    %103 = arith.mulf %101, %102 : vector<10x64xf32>
    %104 = vector.broadcast %85 : vector<1x64xf32> to vector<10x64xf32>
    %105 = arith.addf %103, %104 : vector<10x64xf32>
    %106 = arith.truncf %105 : vector<10x64xf32> to vector<10x64xbf16>
    %c0_41 = arith.constant 0 : index
    %c0_42 = arith.constant 0 : index
    %c0_43 = arith.constant 0 : index
    %107 = vector.load %arg8[%c0_41, %c0_42, %c0_43] : memref<2x64x256xbf16, #tpu.memory_space<vmem>>, vector<1x64x256xbf16>
    %108 = vector.shape_cast %107 : vector<1x64x256xbf16> to vector<64x256xbf16>
    %cst_44 = arith.constant dense<0.000000e+00> : vector<10x256xf32>
    %109 = tpu.matmul %106, %108, %cst_44 {dimension_numbers = #tpu.dot_dimension_numbers<[1], [0], [0], [1], [0, 0, 1, 1], [], []>} : vector<10x64xbf16>, vector<64x256xbf16>, vector<10x256xf32> -> vector<10x256xf32>
    %110 = vector.extract_strided_slice %9 {offsets = [2, 0], sizes = [1, 256], strides = [1, 1]} : vector<4x256xf32> to vector<1x256xf32>
    %111 = vector.broadcast %110 : vector<1x256xf32> to vector<10x256xf32>
    %112 = arith.addf %109, %111 : vector<10x256xf32>
    %cst_45 = arith.constant 5.000000e-01 : f32
    %113 = vector.broadcast %cst_45 : f32 to vector<10x256xf32>
    %114 = arith.mulf %113, %112 : vector<10x256xf32>
    %cst_46 = arith.constant 0.707106769 : f32
    %115 = vector.broadcast %cst_46 : f32 to vector<10x256xf32>
    %116 = arith.mulf %112, %115 : vector<10x256xf32>
    %117 = math.erf %116 : vector<10x256xf32>
    %cst_47 = arith.constant 1.000000e+00 : f32
    %118 = vector.broadcast %cst_47 : f32 to vector<10x256xf32>
    %119 = arith.addf %118, %117 : vector<10x256xf32>
    %120 = arith.mulf %114, %119 : vector<10x256xf32>
    %121 = arith.truncf %120 : vector<10x256xf32> to vector<10x256xbf16>
    %c0_48 = arith.constant 0 : index
    %c0_49 = arith.constant 0 : index
    %c0_50 = arith.constant 0 : index
    %122 = vector.load %arg9[%c0_48, %c0_49, %c0_50] : memref<2x256x64xbf16, #tpu.memory_space<vmem>>, vector<1x256x64xbf16>
    %123 = vector.shape_cast %122 : vector<1x256x64xbf16> to vector<256x64xbf16>
    %cst_51 = arith.constant dense<0.000000e+00> : vector<10x64xf32>
    %124 = tpu.matmul %121, %123, %cst_51 {dimension_numbers = #tpu.dot_dimension_numbers<[1], [0], [0], [1], [0, 0, 1, 1], [], []>} : vector<10x256xbf16>, vector<256x64xbf16>, vector<10x64xf32> -> vector<10x64xf32>
    %125 = vector.extract_strided_slice %9 {offsets = [3, 0], sizes = [1, 64], strides = [1, 1]} : vector<4x256xf32> to vector<1x64xf32>
    %126 = vector.broadcast %125 : vector<1x64xf32> to vector<10x64xf32>
    %127 = arith.addf %124, %126 : vector<10x64xf32>
    %128 = arith.addf %83, %127 : vector<10x64xf32>
    %c1 = arith.constant 1 : index
    %c0_52 = arith.constant 0 : index
    %c0_53 = arith.constant 0 : index
    %129 = vector.load %arg5[%c1, %c0_52, %c0_53] : memref<2x4x64xf32, #tpu.memory_space<vmem>>, vector<1x4x64xf32>
    %130 = vector.shape_cast %129 : vector<1x4x64xf32> to vector<4x64xf32>
    %c1_54 = arith.constant 1 : index
    %c0_55 = arith.constant 0 : index
    %c0_56 = arith.constant 0 : index
    %131 = vector.load %arg10[%c1_54, %c0_55, %c0_56] : memref<2x4x256xf32, #tpu.memory_space<vmem>>, vector<1x4x256xf32>
    %132 = vector.shape_cast %131 : vector<1x4x256xf32> to vector<4x256xf32>
    %133 = vector.extract_strided_slice %130 {offsets = [0, 0], sizes = [1, 64], strides = [1, 1]} : vector<4x64xf32> to vector<1x64xf32>
    %134 = vector.extract_strided_slice %130 {offsets = [1, 0], sizes = [1, 64], strides = [1, 1]} : vector<4x64xf32> to vector<1x64xf32>
    %cst_57 = arith.constant dense<0.000000e+00> : vector<10xf32>
    %135 = vector.multi_reduction <add>, %128, %cst_57 [1] : vector<10x64xf32> to vector<10xf32>
    %136 = vector.shape_cast %135 : vector<10xf32> to vector<10x1xf32>
    %cst_58 = arith.constant 6.400000e+01 : f32
    %137 = vector.broadcast %cst_58 : f32 to vector<10x1xf32>
    %138 = arith.divf %136, %137 : vector<10x1xf32>
    %139 = vector.broadcast %138 : vector<10x1xf32> to vector<10x64xf32>
    %140 = arith.subf %128, %139 : vector<10x64xf32>
    %141 = arith.mulf %140, %140 : vector<10x64xf32>
    %cst_59 = arith.constant dense<0.000000e+00> : vector<10xf32>
    %142 = vector.multi_reduction <add>, %141, %cst_59 [1] : vector<10x64xf32> to vector<10xf32>
    %143 = vector.shape_cast %142 : vector<10xf32> to vector<10x1xf32>
    %cst_60 = arith.constant 6.400000e+01 : f32
    %144 = vector.broadcast %cst_60 : f32 to vector<10x1xf32>
    %145 = arith.divf %143, %144 : vector<10x1xf32>
    %cst_61 = arith.constant 9.99999997E-7 : f32
    %146 = vector.broadcast %cst_61 : f32 to vector<10x1xf32>
    %147 = arith.addf %145, %146 : vector<10x1xf32>
    %148 = math.rsqrt %147 : vector<10x1xf32>
    %149 = vector.broadcast %148 : vector<10x1xf32> to vector<10x64xf32>
    %150 = arith.mulf %140, %149 : vector<10x64xf32>
    %151 = vector.broadcast %133 : vector<1x64xf32> to vector<10x64xf32>
    %152 = arith.mulf %150, %151 : vector<10x64xf32>
    %153 = vector.broadcast %134 : vector<1x64xf32> to vector<10x64xf32>
    %154 = arith.addf %152, %153 : vector<10x64xf32>
    %155 = arith.truncf %154 : vector<10x64xf32> to vector<10x64xbf16>
    %c1_62 = arith.constant 1 : index
    %c0_63 = arith.constant 0 : index
    %c0_64 = arith.constant 0 : index
    %156 = vector.load %arg6[%c1_62, %c0_63, %c0_64] : memref<2x64x192xbf16, #tpu.memory_space<vmem>>, vector<1x64x192xbf16>
    %157 = vector.shape_cast %156 : vector<1x64x192xbf16> to vector<64x192xbf16>
    %cst_65 = arith.constant dense<0.000000e+00> : vector<10x192xf32>
    %158 = tpu.matmul %155, %157, %cst_65 {dimension_numbers = #tpu.dot_dimension_numbers<[1], [0], [0], [1], [0, 0, 1, 1], [], []>} : vector<10x64xbf16>, vector<64x192xbf16>, vector<10x192xf32> -> vector<10x192xf32>
    %159 = vector.extract_strided_slice %132 {offsets = [0, 0], sizes = [1, 192], strides = [1, 1]} : vector<4x256xf32> to vector<1x192xf32>
    %160 = vector.broadcast %159 : vector<1x192xf32> to vector<10x192xf32>
    %161 = arith.addf %158, %160 : vector<10x192xf32>
    %162 = vector.extract_strided_slice %161 {offsets = [0, 0], sizes = [10, 32], strides = [1, 1]} : vector<10x192xf32> to vector<10x32xf32>
    %163 = vector.extract_strided_slice %161 {offsets = [0, 64], sizes = [10, 32], strides = [1, 1]} : vector<10x192xf32> to vector<10x32xf32>
    %164 = vector.extract_strided_slice %161 {offsets = [0, 128], sizes = [10, 32], strides = [1, 1]} : vector<10x192xf32> to vector<10x32xf32>
    %cst_66 = arith.constant dense<0.000000e+00> : vector<10x10xf32>
    %165 = tpu.matmul %162, %163, %cst_66 {dimension_numbers = #tpu.dot_dimension_numbers<[1], [1], [0], [0], [0, 0, 1, 0], [], []>} : vector<10x32xf32>, vector<10x32xf32>, vector<10x10xf32> -> vector<10x10xf32>
    %cst_67 = arith.constant 0.176776692 : f32
    %166 = vector.broadcast %cst_67 : f32 to vector<10x10xf32>
    %167 = arith.mulf %165, %166 : vector<10x10xf32>
    %168 = arith.addf %167, %5 : vector<10x10xf32>
    %cst_68 = arith.constant dense<0xFF800000> : vector<10xf32>
    %169 = vector.multi_reduction <maximumf>, %168, %cst_68 [1] : vector<10x10xf32> to vector<10xf32>
    %170 = vector.shape_cast %169 : vector<10xf32> to vector<10x1xf32>
    %171 = vector.broadcast %170 : vector<10x1xf32> to vector<10x10xf32>
    %172 = arith.subf %168, %171 : vector<10x10xf32>
    %173 = math.exp %172 : vector<10x10xf32>
    %cst_69 = arith.constant dense<0.000000e+00> : vector<10xf32>
    %174 = vector.multi_reduction <add>, %173, %cst_69 [1] : vector<10x10xf32> to vector<10xf32>
    %175 = vector.shape_cast %174 : vector<10xf32> to vector<10x1xf32>
    %176 = tpu.reciprocal %175 {approx = true} : vector<10x1xf32> -> vector<10x1xf32>
    %177 = vector.broadcast %176 : vector<10x1xf32> to vector<10x10xf32>
    %178 = arith.mulf %173, %177 : vector<10x10xf32>
    %cst_70 = arith.constant dense<0.000000e+00> : vector<10x32xf32>
    %179 = tpu.matmul %178, %164, %cst_70 {dimension_numbers = #tpu.dot_dimension_numbers<[1], [0], [0], [1], [0, 0, 1, 1], [], []>} : vector<10x10xf32>, vector<10x32xf32>, vector<10x32xf32> -> vector<10x32xf32>
    %180 = vector.extract_strided_slice %161 {offsets = [0, 32], sizes = [10, 32], strides = [1, 1]} : vector<10x192xf32> to vector<10x32xf32>
    %181 = vector.extract_strided_slice %161 {offsets = [0, 96], sizes = [10, 32], strides = [1, 1]} : vector<10x192xf32> to vector<10x32xf32>
    %182 = vector.extract_strided_slice %161 {offsets = [0, 160], sizes = [10, 32], strides = [1, 1]} : vector<10x192xf32> to vector<10x32xf32>
    %cst_71 = arith.constant dense<0.000000e+00> : vector<10x10xf32>
    %183 = tpu.matmul %180, %181, %cst_71 {dimension_numbers = #tpu.dot_dimension_numbers<[1], [1], [0], [0], [0, 0, 1, 0], [], []>} : vector<10x32xf32>, vector<10x32xf32>, vector<10x10xf32> -> vector<10x10xf32>
    %cst_72 = arith.constant 0.176776692 : f32
    %184 = vector.broadcast %cst_72 : f32 to vector<10x10xf32>
    %185 = arith.mulf %183, %184 : vector<10x10xf32>
    %186 = arith.addf %185, %5 : vector<10x10xf32>
    %cst_73 = arith.constant dense<0xFF800000> : vector<10xf32>
    %187 = vector.multi_reduction <maximumf>, %186, %cst_73 [1] : vector<10x10xf32> to vector<10xf32>
    %188 = vector.shape_cast %187 : vector<10xf32> to vector<10x1xf32>
    %189 = vector.broadcast %188 : vector<10x1xf32> to vector<10x10xf32>
    %190 = arith.subf %186, %189 : vector<10x10xf32>
    %191 = math.exp %190 : vector<10x10xf32>
    %cst_74 = arith.constant dense<0.000000e+00> : vector<10xf32>
    %192 = vector.multi_reduction <add>, %191, %cst_74 [1] : vector<10x10xf32> to vector<10xf32>
    %193 = vector.shape_cast %192 : vector<10xf32> to vector<10x1xf32>
    %194 = tpu.reciprocal %193 {approx = true} : vector<10x1xf32> -> vector<10x1xf32>
    %195 = vector.broadcast %194 : vector<10x1xf32> to vector<10x10xf32>
    %196 = arith.mulf %191, %195 : vector<10x10xf32>
    %cst_75 = arith.constant dense<0.000000e+00> : vector<10x32xf32>
    %197 = tpu.matmul %196, %182, %cst_75 {dimension_numbers = #tpu.dot_dimension_numbers<[1], [0], [0], [1], [0, 0, 1, 1], [], []>} : vector<10x10xf32>, vector<10x32xf32>, vector<10x32xf32> -> vector<10x32xf32>
    %198 = tpu.concatenate %179, %197 in 1 : vector<10x32xf32>, vector<10x32xf32> -> vector<10x64xf32>
    %199 = arith.truncf %198 : vector<10x64xf32> to vector<10x64xbf16>
    %c1_76 = arith.constant 1 : index
    %c0_77 = arith.constant 0 : index
    %c0_78 = arith.constant 0 : index
    %200 = vector.load %arg7[%c1_76, %c0_77, %c0_78] : memref<2x64x64xbf16, #tpu.memory_space<vmem>>, vector<1x64x64xbf16>
    %201 = vector.shape_cast %200 : vector<1x64x64xbf16> to vector<64x64xbf16>
    %cst_79 = arith.constant dense<0.000000e+00> : vector<10x64xf32>
    %202 = tpu.matmul %199, %201, %cst_79 {dimension_numbers = #tpu.dot_dimension_numbers<[1], [0], [0], [1], [0, 0, 1, 1], [], []>} : vector<10x64xbf16>, vector<64x64xbf16>, vector<10x64xf32> -> vector<10x64xf32>
    %203 = vector.extract_strided_slice %132 {offsets = [1, 0], sizes = [1, 64], strides = [1, 1]} : vector<4x256xf32> to vector<1x64xf32>
    %204 = vector.broadcast %203 : vector<1x64xf32> to vector<10x64xf32>
    %205 = arith.addf %202, %204 : vector<10x64xf32>
    %206 = arith.addf %128, %205 : vector<10x64xf32>
    %207 = vector.extract_strided_slice %130 {offsets = [2, 0], sizes = [1, 64], strides = [1, 1]} : vector<4x64xf32> to vector<1x64xf32>
    %208 = vector.extract_strided_slice %130 {offsets = [3, 0], sizes = [1, 64], strides = [1, 1]} : vector<4x64xf32> to vector<1x64xf32>
    %cst_80 = arith.constant dense<0.000000e+00> : vector<10xf32>
    %209 = vector.multi_reduction <add>, %206, %cst_80 [1] : vector<10x64xf32> to vector<10xf32>
    %210 = vector.shape_cast %209 : vector<10xf32> to vector<10x1xf32>
    %cst_81 = arith.constant 6.400000e+01 : f32
    %211 = vector.broadcast %cst_81 : f32 to vector<10x1xf32>
    %212 = arith.divf %210, %211 : vector<10x1xf32>
    %213 = vector.broadcast %212 : vector<10x1xf32> to vector<10x64xf32>
    %214 = arith.subf %206, %213 : vector<10x64xf32>
    %215 = arith.mulf %214, %214 : vector<10x64xf32>
    %cst_82 = arith.constant dense<0.000000e+00> : vector<10xf32>
    %216 = vector.multi_reduction <add>, %215, %cst_82 [1] : vector<10x64xf32> to vector<10xf32>
    %217 = vector.shape_cast %216 : vector<10xf32> to vector<10x1xf32>
    %cst_83 = arith.constant 6.400000e+01 : f32
    %218 = vector.broadcast %cst_83 : f32 to vector<10x1xf32>
    %219 = arith.divf %217, %218 : vector<10x1xf32>
    %cst_84 = arith.constant 9.99999997E-7 : f32
    %220 = vector.broadcast %cst_84 : f32 to vector<10x1xf32>
    %221 = arith.addf %219, %220 : vector<10x1xf32>
    %222 = math.rsqrt %221 : vector<10x1xf32>
    %223 = vector.broadcast %222 : vector<10x1xf32> to vector<10x64xf32>
    %224 = arith.mulf %214, %223 : vector<10x64xf32>
    %225 = vector.broadcast %207 : vector<1x64xf32> to vector<10x64xf32>
    %226 = arith.mulf %224, %225 : vector<10x64xf32>
    %227 = vector.broadcast %208 : vector<1x64xf32> to vector<10x64xf32>
    %228 = arith.addf %226, %227 : vector<10x64xf32>
    %229 = arith.truncf %228 : vector<10x64xf32> to vector<10x64xbf16>
    %c1_85 = arith.constant 1 : index
    %c0_86 = arith.constant 0 : index
    %c0_87 = arith.constant 0 : index
    %230 = vector.load %arg8[%c1_85, %c0_86, %c0_87] : memref<2x64x256xbf16, #tpu.memory_space<vmem>>, vector<1x64x256xbf16>
    %231 = vector.shape_cast %230 : vector<1x64x256xbf16> to vector<64x256xbf16>
    %cst_88 = arith.constant dense<0.000000e+00> : vector<10x256xf32>
    %232 = tpu.matmul %229, %231, %cst_88 {dimension_numbers = #tpu.dot_dimension_numbers<[1], [0], [0], [1], [0, 0, 1, 1], [], []>} : vector<10x64xbf16>, vector<64x256xbf16>, vector<10x256xf32> -> vector<10x256xf32>
    %233 = vector.extract_strided_slice %132 {offsets = [2, 0], sizes = [1, 256], strides = [1, 1]} : vector<4x256xf32> to vector<1x256xf32>
    %234 = vector.broadcast %233 : vector<1x256xf32> to vector<10x256xf32>
    %235 = arith.addf %232, %234 : vector<10x256xf32>
    %cst_89 = arith.constant 5.000000e-01 : f32
    %236 = vector.broadcast %cst_89 : f32 to vector<10x256xf32>
    %237 = arith.mulf %236, %235 : vector<10x256xf32>
    %cst_90 = arith.constant 0.707106769 : f32
    %238 = vector.broadcast %cst_90 : f32 to vector<10x256xf32>
    %239 = arith.mulf %235, %238 : vector<10x256xf32>
    %240 = math.erf %239 : vector<10x256xf32>
    %cst_91 = arith.constant 1.000000e+00 : f32
    %241 = vector.broadcast %cst_91 : f32 to vector<10x256xf32>
    %242 = arith.addf %241, %240 : vector<10x256xf32>
    %243 = arith.mulf %237, %242 : vector<10x256xf32>
    %244 = arith.truncf %243 : vector<10x256xf32> to vector<10x256xbf16>
    %c1_92 = arith.constant 1 : index
    %c0_93 = arith.constant 0 : index
    %c0_94 = arith.constant 0 : index
    %245 = vector.load %arg9[%c1_92, %c0_93, %c0_94] : memref<2x256x64xbf16, #tpu.memory_space<vmem>>, vector<1x256x64xbf16>
    %246 = vector.shape_cast %245 : vector<1x256x64xbf16> to vector<256x64xbf16>
    %cst_95 = arith.constant dense<0.000000e+00> : vector<10x64xf32>
    %247 = tpu.matmul %244, %246, %cst_95 {dimension_numbers = #tpu.dot_dimension_numbers<[1], [0], [0], [1], [0, 0, 1, 1], [], []>} : vector<10x256xbf16>, vector<256x64xbf16>, vector<10x64xf32> -> vector<10x64xf32>
    %248 = vector.extract_strided_slice %132 {offsets = [3, 0], sizes = [1, 64], strides = [1, 1]} : vector<4x256xf32> to vector<1x64xf32>
    %249 = vector.broadcast %248 : vector<1x64xf32> to vector<10x64xf32>
    %250 = arith.addf %247, %249 : vector<10x64xf32>
    %251 = arith.addf %206, %250 : vector<10x64xf32>
    %c0_96 = arith.constant 0 : index
    %c0_97 = arith.constant 0 : index
    %252 = vector.load %arg11[%c0_96, %c0_97] : memref<2x64xf32, #tpu.memory_space<vmem>>, vector<2x64xf32>
    %253 = vector.extract_strided_slice %251 {offsets = [0, 0], sizes = [1, 64], strides = [1, 1]} : vector<10x64xf32> to vector<1x64xf32>
    %254 = vector.extract_strided_slice %251 {offsets = [5, 0], sizes = [1, 64], strides = [1, 1]} : vector<10x64xf32> to vector<1x64xf32>
    %255 = tpu.concatenate %253, %254 in 0 : vector<1x64xf32>, vector<1x64xf32> -> vector<2x64xf32>
    %256 = vector.extract_strided_slice %252 {offsets = [0, 0], sizes = [1, 64], strides = [1, 1]} : vector<2x64xf32> to vector<1x64xf32>
    %257 = vector.extract_strided_slice %252 {offsets = [1, 0], sizes = [1, 64], strides = [1, 1]} : vector<2x64xf32> to vector<1x64xf32>
    %cst_98 = arith.constant dense<0.000000e+00> : vector<2xf32>
    %258 = vector.multi_reduction <add>, %255, %cst_98 [1] : vector<2x64xf32> to vector<2xf32>
    %259 = vector.shape_cast %258 : vector<2xf32> to vector<2x1xf32>
    %cst_99 = arith.constant 6.400000e+01 : f32
    %260 = vector.broadcast %cst_99 : f32 to vector<2x1xf32>
    %261 = arith.divf %259, %260 : vector<2x1xf32>
    %262 = vector.broadcast %261 : vector<2x1xf32> to vector<2x64xf32>
    %263 = arith.subf %255, %262 : vector<2x64xf32>
    %264 = arith.mulf %263, %263 : vector<2x64xf32>
    %cst_100 = arith.constant dense<0.000000e+00> : vector<2xf32>
    %265 = vector.multi_reduction <add>, %264, %cst_100 [1] : vector<2x64xf32> to vector<2xf32>
    %266 = vector.shape_cast %265 : vector<2xf32> to vector<2x1xf32>
    %cst_101 = arith.constant 6.400000e+01 : f32
    %267 = vector.broadcast %cst_101 : f32 to vector<2x1xf32>
    %268 = arith.divf %266, %267 : vector<2x1xf32>
    %cst_102 = arith.constant 9.99999997E-7 : f32
    %269 = vector.broadcast %cst_102 : f32 to vector<2x1xf32>
    %270 = arith.addf %268, %269 : vector<2x1xf32>
    %271 = math.rsqrt %270 : vector<2x1xf32>
    %272 = vector.broadcast %271 : vector<2x1xf32> to vector<2x64xf32>
    %273 = arith.mulf %263, %272 : vector<2x64xf32>
    %274 = vector.broadcast %256 : vector<1x64xf32> to vector<2x64xf32>
    %275 = arith.mulf %273, %274 : vector<2x64xf32>
    %276 = vector.broadcast %257 : vector<1x64xf32> to vector<2x64xf32>
    %277 = arith.addf %275, %276 : vector<2x64xf32>
    %c0_103 = arith.constant 0 : index
    %c0_104 = arith.constant 0 : index
    %278 = vector.load %arg12[%c0_103, %c0_104] : memref<2x64xf32, #tpu.memory_space<vmem>>, vector<2x64xf32>
    tpu.vector_store %arg12[%c0_103, %c0_104], %277 {strides = array<i32>} : memref<2x64xf32, #tpu.memory_space<vmem>>, vector<2x64xf32>,
    return
  }
  func.func @transform_0(%arg0: i32) -> (i32, i32) {
    %c0_i32 = arith.constant 0 : i32
    %c0_i32_0 = arith.constant 0 : i32
    return %arg0, %c0_i32 : i32, i32
  }
  func.func @transform_1(%arg0: i32) -> (i32, i32) {
    %c0_i32 = arith.constant 0 : i32
    %c0_i32_0 = arith.constant 0 : i32
    %c0_i32_1 = arith.constant 0 : i32
    return %c0_i32, %c0_i32_0 : i32, i32
  }
  func.func @transform_2(%arg0: i32) -> (i32, i32) {
    %c0_i32 = arith.constant 0 : i32
    %c0_i32_0 = arith.constant 0 : i32
    %c0_i32_1 = arith.constant 0 : i32
    return %c0_i32, %c0_i32_0 : i32, i32
  }
  func.func @transform_3(%arg0: i32) -> (i32, i32) {
    %c0_i32 = arith.constant 0 : i32
    %c0_i32_0 = arith.constant 0 : i32
    %c0_i32_1 = arith.constant 0 : i32
    return %c0_i32, %c0_i32_0 : i32, i32
  }
  func.func @transform_4(%arg0: i32) -> (i32, i32, i32) {
    %c0_i32 = arith.constant 0 : i32
    %c0_i32_0 = arith.constant 0 : i32
    %c0_i32_1 = arith.constant 0 : i32
    %c0_i32_2 = arith.constant 0 : i32
    return %c0_i32, %c0_i32_0, %c0_i32_1 : i32, i32, i32
  }
  func.func @transform_5(%arg0: i32) -> (i32, i32, i32) {
    %c0_i32 = arith.constant 0 : i32
    %c0_i32_0 = arith.constant 0 : i32
    %c0_i32_1 = arith.constant 0 : i32
    %c0_i32_2 = arith.constant 0 : i32
    return %c0_i32, %c0_i32_0, %c0_i32_1 : i32, i32, i32
  }
  func.func @transform_6(%arg0: i32) -> (i32, i32, i32) {
    %c0_i32 = arith.constant 0 : i32
    %c0_i32_0 = arith.constant 0 : i32
    %c0_i32_1 = arith.constant 0 : i32
    %c0_i32_2 = arith.constant 0 : i32
    return %c0_i32, %c0_i32_0, %c0_i32_1 : i32, i32, i32
  }
  func.func @transform_7(%arg0: i32) -> (i32, i32, i32) {
    %c0_i32 = arith.constant 0 : i32
    %c0_i32_0 = arith.constant 0 : i32
    %c0_i32_1 = arith.constant 0 : i32
    %c0_i32_2 = arith.constant 0 : i32
    return %c0_i32, %c0_i32_0, %c0_i32_1 : i32, i32, i32
  }
  func.func @transform_8(%arg0: i32) -> (i32, i32, i32) {
    %c0_i32 = arith.constant 0 : i32
    %c0_i32_0 = arith.constant 0 : i32
    %c0_i32_1 = arith.constant 0 : i32
    %c0_i32_2 = arith.constant 0 : i32
    return %c0_i32, %c0_i32_0, %c0_i32_1 : i32, i32, i32
  }
  func.func @transform_9(%arg0: i32) -> (i32, i32, i32) {
    %c0_i32 = arith.constant 0 : i32
    %c0_i32_0 = arith.constant 0 : i32
    %c0_i32_1 = arith.constant 0 : i32
    %c0_i32_2 = arith.constant 0 : i32
    return %c0_i32, %c0_i32_0, %c0_i32_1 : i32, i32, i32
  }
  func.func @transform_10(%arg0: i32) -> (i32, i32) {
    %c0_i32 = arith.constant 0 : i32
    %c0_i32_0 = arith.constant 0 : i32
    %c0_i32_1 = arith.constant 0 : i32
    return %c0_i32, %c0_i32_0 : i32, i32
  }
  func.func @transform_11(%arg0: i32) -> (i32, i32) {
    %c0_i32 = arith.constant 0 : i32
    %c0_i32_0 = arith.constant 0 : i32
    return %arg0, %c0_i32 : i32, i32
  }
}

</mosaic_0001>

<bundles_post_ra>
// kernel: tpu_custom_call.1
= control target key start
LH: loop header
LB: loop body
LE: loop exit
PB: predicated region body
PF: predicated region fallthrough
CT: control target
= control target key end

     0   :  { %s4198_s0 = inlined_call_operand.vmem [shape: bf16[10,768], index: 0, kind: input, shape index: {}]   ;;  %s4199_s1 = inlined_call_operand.vmem [shape: f32[10,64], index: 1, kind: input, shape index: {}]   ;;  %s4200_s2 = inlined_call_operand.vmem [shape: f32[10,10], index: 2, kind: input, shape index: {}]   ;;  %s4201_s3 = inlined_call_operand.vmem [shape: bf16[768,64], index: 3, kind: input, shape index: {}]   ;;  %s4202_s4 = inlined_call_operand.vmem [shape: f32[2,4,64], index: 4, kind: input, shape index: {}]   ;;  %s4203_s5 = inlined_call_operand.vmem [shape: bf16[2,64,192], index: 5, kind: input, shape index: {}]   ;;  %s4204_s6 = inlined_call_operand.vmem [shape: bf16[2,64,64], index: 6, kind: input, shape index: {}]   ;;  %s4205_s7 = inlined_call_operand.vmem [shape: bf16[2,64,256], index: 7, kind: input, shape index: {}]   ;;  %s4206_s8 = inlined_call_operand.vmem [shape: bf16[2,256,64], index: 8, kind: input, shape index: {}]   ;;  %s4207_s9 = inlined_call_operand.vmem [shape: f32[2,4,256], index: 9, kind: input, shape index: {}]   ;;  %s4208_s10 = inlined_call_operand.vmem [shape: f32[2,64], index: 10, kind: input, shape index: {}]   ;;  %s4209_s11 = inlined_call_operand.hbm [shape: f32[2,64], index: 11, kind: output, shape index: {}]  }
   0x1   :  { %v3188_v0 = vld [vmem:[%s4201_s3 + $0x40] sm:$0xff]   ;;  %v3192_v4 = vld [vmem:[%s4201_s3 + $0x48] sm:$0xff]   ;;  %v3196_v8 = vld [vmem:[%s4201_s3 + $0x50] sm:$0xff]  }
   0x2   :  { %v3189_v1 = vld [vmem:[%s4201_s3] sm:$0xff]   ;;  %2860 = vmatprep.subr.bf16.mxu0 %v3188_v0  ;;  %v3193_v5 = vld [vmem:[%s4201_s3 + $0x8] sm:$0xff]   ;;  %v3197_v9 = vld [vmem:[%s4201_s3 + $0x10] sm:$0xff]  }
   0x3   :  { %v3190_v2 = vld [vmem:[%s4201_s3 + $0xc0] sm:$0xff]   ;;  %2861 = vmatpush3.bf16.msra.mxu0 %v3189_v1  ;;  %v3194_v6 = vld [vmem:[%s4201_s3 + $0xc8] sm:$0xff]   ;;  %v3198_v10 = vld [vmem:[%s4201_s3 + $0xd0] sm:$0xff]  }
   0x4   :  { %v3191_v3 = vld [vmem:[%s4201_s3 + $0x80] sm:$0xff]   ;;  %2882 = vmatprep.subr.bf16.mxu1 %v3190_v2  ;;  %2862 = vmatprep.subr.bf16.mxu0 %v3192_v4  ;;  %v3195_v7 = vld [vmem:[%s4201_s3 + $0x88] sm:$0xff]   ;;  %v3199_v11 = vld [vmem:[%s4201_s3 + $0x90] sm:$0xff]  }
   0x5   :  { %2883 = vmatpush3.bf16.msra.mxu1 %v3191_v3  ;;  %v3200_v12 = vld [vmem:[%s4201_s3 + $0x58] sm:$0xff]   ;;  %v3204_v16 = vld [vmem:[%s4201_s3 + $0x60] sm:$0xff]   ;;  %v3208_v20 = vld [vmem:[%s4201_s3 + $0x68] sm:$0xff]  }
   0x6   :  { %2884 = vmatprep.subr.bf16.mxu1 %v3194_v6  ;;  %v3201_v13 = vld [vmem:[%s4201_s3 + $0x18] sm:$0xff]   ;;  %v3205_v17 = vld [vmem:[%s4201_s3 + $0x20] sm:$0xff]   ;;  %v3209_v21 = vld [vmem:[%s4201_s3 + $0x28] sm:$0xff]  }
   0x7   :  { %2863 = vmatpush3.bf16.msra.mxu0 %v3193_v5  ;;  %v3202_v14 = vld [vmem:[%s4201_s3 + $0xd8] sm:$0xff]   ;;  %v3206_v18 = vld [vmem:[%s4201_s3 + $0xe0] sm:$0xff]   ;;  %v3210_v22 = vld [vmem:[%s4201_s3 + $0xe8] sm:$0xff]  }
   0x8   :  { %2864 = vmatprep.subr.bf16.mxu0 %v3196_v8  ;;  %v3203_v15 = vld [vmem:[%s4201_s3 + $0x98] sm:$0xff]   ;;  %v3207_v19 = vld [vmem:[%s4201_s3 + $0xa0] sm:$0xff]   ;;  %v3211_v23 = vld [vmem:[%s4201_s3 + $0xa8] sm:$0xff]  }
   0x9   :  { %2885 = vmatpush3.bf16.msra.mxu1 %v3195_v7  ;;  %v3212_v24 = vld [vmem:[%s4201_s3 + $0x70] sm:$0xff]   ;;  %v3216_v28 = vld [vmem:[%s4201_s3 + $0x78] sm:$0xff]   ;;  %v3223_v34 = vld [vmem:[%s4201_s3 + $0x140] sm:$0xff]  }
   0xa   :  { %2886 = vmatprep.subr.bf16.mxu1 %v3198_v10  ;;  %v3213_v25 = vld [vmem:[%s4201_s3 + $0x30] sm:$0xff]   ;;  %v3217_v29 = vld [vmem:[%s4201_s3 + $0x38] sm:$0xff]   ;;  %v3224_v35 = vld [vmem:[%s4198_s0 + $0x8] ss:$24 sps:$4 sm:$0x1f]  }
   0xb   :  { %2865 = vmatpush3.bf16.msra.mxu0 %v3197_v9  ;;  %v3214_v26 = vld [vmem:[%s4201_s3 + $0xf0] sm:$0xff]   ;;  %v3218_v30 = vld [vmem:[%s4201_s3 + $0xf8] sm:$0xff]   ;;  %v3226_v36 = vld [vmem:[%s4198_s0 + $0xc] ss:$24 sps:$4 sm:$0x1f]  }
   0xc   :  { %2866 = vmatprep.subr.bf16.mxu0 %v3200_v12  ;;  %v3215_v27 = vld [vmem:[%s4201_s3 + $0xb0] sm:$0xff]   ;;  %v3219_v31 = vld [vmem:[%s4198_s0] ss:$24 sps:$4 sm:$0x1f]   ;;  %535 = vmatprep.mubr.bf16.mxu1 %v3226_v36  ;;  %v3228_v38 = vld [vmem:[%s4201_s3 + $0x148] sm:$0xff]  }
   0xd   :  { %2887 = vmatpush3.bf16.msra.mxu1 %v3199_v11  ;;  %v3221_v32 = vld [vmem:[%s4198_s0 + $0x4] ss:$24 sps:$4 sm:$0x1f]   ;;  %v3229_v39 = vld [vmem:[%s4201_s3 + $0x108] sm:$0xff]   ;;  %v3230_v40 = vld [vmem:[%s4201_s3 + $0x150] sm:$0xff]  }
   0xe   :  { %2888 = vmatprep.subr.bf16.mxu1 %v3202_v14  ;;  %v3222_v33 = vld [vmem:[%s4201_s3 + $0xb8] sm:$0xff]   ;;  %494 = vmatprep.mubr.bf16.mxu0 %v3221_v32  ;;  %v3227_v37 = vld [vmem:[%s4201_s3 + $0x100] sm:$0xff]   ;;  %v3231_v41 = vld [vmem:[%s4201_s3 + $0x110] sm:$0xff]  }
   0xf   :  { %2867 = vmatpush3.bf16.msra.mxu0 %v3201_v13  ;;  %v3232_v42 = vld [vmem:[%s4201_s3 + $0x158] sm:$0xff]   ;;  %v3234_v44 = vld [vmem:[%s4201_s3 + $0x160] sm:$0xff]   ;;  %v3236_v46 = vld [vmem:[%s4201_s3 + $0x168] sm:$0xff]  }
  0x10   :  { %2868 = vmatprep.subr.bf16.mxu0 %v3204_v16  ;;  %v3233_v43 = vld [vmem:[%s4201_s3 + $0x118] sm:$0xff]   ;;  %v3235_v45 = vld [vmem:[%s4201_s3 + $0x120] sm:$0xff]   ;;  %v3237_v47 = vld [vmem:[%s4201_s3 + $0x128] sm:$0xff]  }
  0x11   :  { %2889 = vmatpush3.bf16.msra.mxu1 %v3203_v15  ;;  %v3244_v48 = vld [vmem:[%s4198_s0 + $0x14] ss:$24 sps:$4 sm:$0x1f]   ;;  %v3240_v51 = vld [vmem:[%s4201_s3 + $0x178] sm:$0xff]  }
  0x12   :  { %2890 = vmatprep.subr.bf16.mxu1 %v3206_v18  ;;  %v3238_v49 = vld [vmem:[%s4201_s3 + $0x170] sm:$0xff]   ;;  %v3241_v52 = vld [vmem:[%s4201_s3 + $0x138] sm:$0xff]  }
  0x13   :  { %2869 = vmatpush3.bf16.msra.mxu0 %v3205_v17  ;;  %v3239_v50 = vld [vmem:[%s4201_s3 + $0x130] sm:$0xff]  }
  0x14   :  { %2870 = vmatprep.subr.bf16.mxu0 %v3208_v20  ;;  %v3242_v53 = vld [vmem:[%s4198_s0 + $0x10] ss:$24 sps:$4 sm:$0x1f]  }
  0x15   :  { %2891 = vmatpush3.bf16.msra.mxu1 %v3207_v19 }
  0x16   :  { %2892 = vmatprep.subr.bf16.mxu1 %v3210_v22 }
  0x17   :  { %2871 = vmatpush3.bf16.msra.mxu0 %v3209_v21 }
  0x18   :  { %2872 = vmatprep.subr.bf16.mxu0 %v3212_v24 }
  0x19   :  { %2893 = vmatpush3.bf16.msra.mxu1 %v3211_v23 }
  0x1a   :  { %2894 = vmatprep.subr.bf16.mxu1 %v3214_v26 }
  0x1b   :  { %2873 = vmatpush3.bf16.msra.mxu0 %v3213_v25 }
  0x1c   :  { %2874 = vmatprep.subr.bf16.mxu0 %v3216_v28 }
  0x1d   :  { %2895 = vmatpush3.bf16.msra.mxu1 %v3215_v27 }
  0x1e   :  { %2896 = vmatprep.subr.bf16.mxu1 %v3218_v30 }
  0x1f   :  { %2875 = vmatpush3.bf16.msra.mxu0 %v3217_v29 }
  0x20   :  { %2904 = vmatprep.subr.bf16.mxu0 %v3223_v34 }
  0x21   :  { %2897 = vmatpush3.bf16.msra.mxu1 %v3222_v33 }
  0x22   :  { %495 = vmatmul.mubr.bf16.vlgmr.msra.gmra.mrb[0].mxu0 %v3219_v31 }
  0x23   :  { %2905 = vmatpush3.bf16.msra.mxu0 %v3227_v37  ;;  %576 = vmatprep.mubr.bf16.mxu0 %v3244_v48 }
  0x24   :  { %536 = vmatmul.mubr.bf16.vlgmr.msra.gmra.mrb[0].mxu1 %v3224_v35  ;;  %2906 = vmatprep.subr.bf16.mxu0 %v3228_v38 }
  0x27   :  { %2907 = vmatpush3.bf16.msra.mxu0 %v3229_v39 }
  0x28   :  { %2908 = vmatprep.subr.bf16.mxu0 %v3230_v40 }
  0x2b   :  { %2909 = vmatpush3.bf16.msra.mxu0 %v3231_v41 }
  0x2c   :  { %2910 = vmatprep.subr.bf16.mxu0 %v3232_v42 }
  0x2f   :  { %2911 = vmatpush3.bf16.msra.mxu0 %v3233_v43 }
  0x30   :  { %2912 = vmatprep.subr.bf16.mxu0 %v3234_v44 }
  0x33   :  { %2913 = vmatpush3.bf16.msra.mxu0 %v3235_v45 }
  0x34   :  { %2914 = vmatprep.subr.bf16.mxu0 %v3236_v46 }
  0x37   :  { %2915 = vmatpush3.bf16.msra.mxu0 %v3237_v47 }
  0x38   :  { %2916 = vmatprep.subr.bf16.mxu0 %v3238_v49 }
  0x3b   :  { %2917 = vmatpush3.bf16.msra.mxu0 %v3239_v50 }
  0x3c   :  { %2918 = vmatprep.subr.bf16.mxu0 %v3240_v51 }
  0x3f   :  { %2919 = vmatpush3.bf16.msra.mxu0 %v3241_v52 }
  0x42   :  { %577 = vmatmul.mubr.bf16.vlgmr.msra.gmra.mrb[4].mxu0 %v3242_v53 }
  0x43   :  { %16 = vsyncpa [#allocation3], 0  ;;  %v142_v55 = vld [vmem:[%s4199_s1] sm:$0xff]  ;;  %v143_v60 = vld [vmem:[%s4199_s1 + $0x8] sm:$0x3]  ;;  %vm589_vm0 = vcmask 523264   ;;  %v618_v40 = vlaneseq }
  0x44   :  { %vm593_vm1 = vcmask 517120   ;;  %v3247_v28 = vld [vmem:[%s4203_s5 + $0x4] ss:$8 sps:$4 sm:$0xff]   ;;  %v3245_v29 = vld [vmem:[%s4203_s5] ss:$8 sps:$4 sm:$0xff]   ;;  %v3423_v36 = vmov 0  }
  0x45   :  { %701 = vmatprep.subr.bf16.mxu1 %v3247_v28  ;;  %v3250_v30 = vld [vmem:[%s4203_s5 + $0x14] ss:$8 sps:$4 sm:$0xff]   ;;  %v3248_v31 = vld [vmem:[%s4203_s5 + $0x10] ss:$8 sps:$4 sm:$0xff]   ;;  %v3253_v32 = vld [vmem:[%s4203_s5 + $0x24] ss:$8 sps:$4 sm:$0xff]   ;;  %733 = vmatprep.mubr.bf16.mxu1 %v3423_v36 }
  0x46   :  { %702 = vmatpush1.bf16.msra.mxu1 %v3245_v29  ;;  %v3251_v33 = vld [vmem:[%s4203_s5 + $0x20] ss:$8 sps:$4 sm:$0xff]   ;;  %v3254_v34 = vld [vmem:[%s4203_s5 + $0x30] ss:$8 sps:$4 sm:$0xff]   ;;  %v3256_v35 = vld [vmem:[%s4203_s5 + $0x34] ss:$8 sps:$4 sm:$0xff]  }
  0x47   :  { %703 = vmatprep.subr.bf16.mxu1 %v3250_v30  ;;  %v3696_v44 = vshrl.u32 %v618_v40, 7  ;;  %v3704_v46 = vld [vmem:[%s4202_s4] sm:$0xf]  ;;  %vm750_vm2 = vcmask 261120   ;;  %s3424_s13 = smov 64   ;;  %s3425_s3 = smov 96  }
  0x48   :  { %vm868_vm3 = vcmask 1041408   ;;  %vm3741_vm4 = vmpackc.low %vm750_vm2, %vm750_vm2  ;;  %vm3426_vm5 = vmmov 1   ;;  %vm838_vm7 = vcmask 80896   ;;  %vm842_vm8 = vcmask 74752  }
  0x49   :  { %v3699_v45 = vsub.s32 0, %v3696_v44  ;;  %v3709_v50 = vsub.s32 1, %v3696_v44  ;;  %vm3745_vm6 = vmpackc.low %vm868_vm3, %vm3426_vm5  ;;  %vm3429_vm9 = vmmov 0   ;;  %vm2602_vm10 = vcmask 1040384  }
  0x4a   :  { %704 = vmatpush1.bf16.msra.mxu1 %v3248_v31 }
  0x4b   :  { %705 = vmatprep.subr.bf16.mxu1 %v3253_v32  ;;  %v621_v48 = vrot.slane %v3704_v46, %v3699_v45 }
  0x4e   :  { %706 = vmatpush1.bf16.msra.mxu1 %v3251_v33 }
  0x4f   :  { %707 = vmatprep.subr.bf16.mxu1 %v3256_v35 }
  0x52   :  { %708 = vmatpush1.bf16.msra.mxu1 %v3254_v34 }
  0xf5   :  { %v2876_v54 = vpop.f32.mrb[0].mxu0 }
  0xf6   :  { %v2877_v56 = vpop.f32.mrb[1].mxu0 }
  0xf7   :  { %v2878_v57 = vadd.f32 %v2877_v56, %v2876_v54  ;;  %v2879_v58 = vpop.f32.mrb[2].mxu0  ;;  %v2898_v59 = vpop.f32.mrb[0].mxu1  ;;  %v627_v54 = vrot.slane %v3704_v46, %v3709_v50 }
  0xf8   :  { %v2880_v61 = vpop.f32.mrb[3].mxu0  ;;  %v2899_v0 = vpop.f32.mrb[1].mxu1 }
  0xf9   :  { %v497_v62 = vadd.f32 %v2878_v57, %v142_v55  ;;  %v2881_v63 = vadd.f32 %v2880_v61, %v2879_v58  ;;  %v2900_v1 = vadd.f32 %v2899_v0, %v2898_v59  ;;  %v2901_v2 = vpop.f32.mrb[2].mxu1  ;;  %v3717_v59 = vld [vmem:[%s4207_s9] sm:$0xff] }
  0xfa   :  { %v2902_v4 = vpop.f32.mrb[3].mxu1  ;;  %v643_v61 = vrot.slane %v3717_v59, %v3699_v45 }
  0xfb   :  { %v500_v3 = vadd.f32 %v2881_v63, %v143_v60  ;;  %v538_v5 = vadd.f32 %v2900_v1, %v497_v62  ;;  %v2903_v6 = vadd.f32 %v2902_v4, %v2901_v2  ;;  %v646_v60 = vsub.s32 4, %v3696_v44 }
  0xfc   :  { %v653_v63 = vrot.slane %v643_v61, %v3699_v45 }
  0xfd   :  { %v541_v7 = vadd.f32 %v2903_v6, %v500_v3  ;;  %v647_v62 = vrot.slane %v3717_v59, %v646_v60 }
  0xff   :  { %v657_v1 = vrot.slane %v647_v62, %v3699_v45 }
 0x115   :  { %v2920_v8 = vpop.f32.mrb[4].mxu0 }
 0x116   :  { %v2921_v9 = vpop.f32.mrb[5].mxu0 }
 0x117   :  { %v2922_v10 = vadd.f32 %v2921_v9, %v2920_v8  ;;  %v2923_v11 = vpop.f32.mrb[6].mxu0 }
 0x118   :  { %v2924_v12 = vpop.f32.mrb[7].mxu0 }
 0x119   :  { %v3659_v13 = vadd.f32 %v2922_v10, %v538_v5  ;;  %v2925_v14 = vadd.f32 %v2924_v12, %v2923_v11 }
 0x11b   :  { %v3661_v15 = vadd.f32 %v2925_v14, %v541_v7  ;;  %v590_v16 = vsel %vm589_vm0, %v3659_v13, 0.0 }
 0x11c   :  { %591 = vadd.xlane.f32.xlu0 %v590_v16 }
 0x11d   :  { %v594_v17 = vsel %vm593_vm1, %v3661_v15, 0.0 }
 0x120   :  { %595 = vadd.xlane.f32.xlu0 %v594_v17 }
 0x1a9   :  { %v592_v18 = vpop.xlane.xlu0 %591 }
 0x1aa   :  { %v598_v19 = vmul.f32 0.015625, %v592_v18 }
 0x1ac   :  { %v600_v20 = vsub.f32 %v3659_v13, %v598_v19  ;;  %v3303_v19 = vld [vmem:[%s4204_s6 + $0x30] sm:$0xff]  }
 0x1ad   :  { %v596_v21 = vpop.xlane.xlu0 %595 }
 0x1ae   :  { %v599_v22 = vmul.f32 0.015625, %v596_v21  ;;  %v602_v23 = vmul.f32 %v600_v20, %v600_v20 }
 0x1b0   :  { %v601_v24 = vsub.f32 %v3661_v15, %v599_v22  ;;  %v604_v25 = vsel %vm589_vm0, %v602_v23, 0.0  ;;  %v3761_v22 = vld [vmem:[%s4200_s2] sm:$0xff] }
 0x1b1   :  { %605 = vadd.xlane.f32.xlu1 %v604_v25  ;;  %v3766_v25 = vld [vmem:[%s4200_s2 + $0x8] sm:$0x3]  ;;  %s3427_s2 = smov 32  }
 0x1b2   :  { %v603_v26 = vmul.f32 %v601_v24, %v601_v24 }
 0x1b4   :  { %v607_v27 = vsel %vm593_vm1, %v603_v26, 0.0 }
 0x1b5   :  { %608 = vadd.xlane.f32.xlu1 %v607_v27 }
 0x23e   :  { %v606_v37 = vpop.xlane.xlu1 %605 }
 0x23f   :  { %v610_v38 = vmul.f32 0.015625, %v606_v37 }
 0x241   :  { %v612_v39 = vadd.f32 1e-06, %v610_v38 }
 0x242   :  { %v609_v41 = vpop.xlane.xlu1 %608 }
 0x243   :  { %3333 = vrsqrt.f32 %v612_v39  ;;  %v611_v42 = vmul.f32 0.015625, %v609_v41 }
 0x245   :  { %v613_v43 = vadd.f32 1e-06, %v611_v42 }
 0x247   :  { %3335 = vrsqrt.f32 %v613_v43 }
 0x24d   :  { %v3334_v47 = vpop.eup %3333 }
 0x24e   :  { %v616_v49 = vmul.f32 %v3334_v47, %v600_v20 }
 0x250   :  { %v622_v52 = vmul.f32 %v621_v48, %v616_v49 }
 0x251   :  { %v3336_v51 = vpop.eup %3335 }
 0x252   :  { %v617_v53 = vmul.f32 %v3336_v51, %v601_v24  ;;  %v628_v56 = vadd.f32 %v627_v54, %v622_v52 }
 0x254   :  { %v623_v55 = vmul.f32 %v621_v48, %v617_v53 }
 0x256   :  { %v629_v57 = vadd.f32 %v627_v54, %v623_v55 }
 0x258   :  { %v630_v58 = vpack.c.bf16 %v629_v57, %v628_v56 }
 0x25a   :  { %2704 = vmatmul.mubr.msk.bf16.vlgmr.msra.gmra.mrb[4].mxu1 %vm589_vm0, %v630_v58 }
 0x32d   :  { %v735_v0 = vpop.f32.mrb[4].mxu1 }
 0x32e   :  { %v736_v2 = vadd.f32 %v735_v0, %v653_v63  ;;  %v737_v3 = vpop.f32.mrb[5].mxu1 }
 0x32f   :  { %v739_v4 = vpop.f32.mrb[6].mxu1  ;;  %v3728_v7 = vadd.f32 %v737_v3, %v657_v1 }
 0x330   :  { %v740_v5 = vadd.f32 %v739_v4, %v653_v63  ;;  %v741_v6 = vpop.f32.mrb[7].mxu1  ;;  %3016 = vmatprep.mubr.msk.f32.mxu1 %vm750_vm2, %v736_v2 }
 0x331   :  { %v3730_v8 = vadd.f32 %v741_v6, %v657_v1 }
 0x332   :  { %v3148_v9 = vpack.i.bf16 %v740_v5, %v736_v2 }
 0x333   :  { %v3158_v10 = vpack.i.bf16 %v3730_v8, %v3728_v7  ;;  %v3098_v11 = vpack.c.bf16 %v3730_v8, %v3728_v7  ;;  %v3257_v7 = vld [vmem:[%s4204_s6] sm:$0xff]   ;;  %v3428_v8 = vmov 0.0  }
 0x334   :  { %3149 = vrot.lane.b32.xlu0 %v3148_v9, %s3424_s13 }
 0x338   :  { %947 = vrot.lane.b32.xlu0 %v736_v2, %s3425_s3 }
 0x33c   :  { %949 = vrot.lane.b32.xlu0 %v740_v5, %s3425_s3 }
 0x3a6   :  { %v3150_v12 = vpop.permute.xlu0 %3149 }
 0x3a7   :  { %v3152_v14 = vunpack.i.h.bf16 %v3150_v12  ;;  %v3151_v16 = vunpack.i.l.bf16 %v3150_v12 }
 0x3a9   :  { %v3092_v18 = vpack.c.bf16 %v3152_v14, %v3151_v16 }
 0x3aa   :  { %v948_v55 = vpop.permute.xlu0 %947 }
 0x3ab   :  { %3094 = vmatprep.subr.msk.bf16.mxu1 %vm3741_vm4, %v3092_v18 }
 0x3ac   :  { %3097 = vmatpush3.bf16.xpose.msk.msra.mxu1 %vm3741_vm4, %v3092_v18 }
 0x3ad   :  { %3100 = vmatprep.subr.msk.bf16.mxu1 %vm3745_vm6, %v3098_v11 }
 0x3ae   :  { %v950_v56 = vpop.permute.xlu0 %949 }
 0x3b3   :  { %3017 = vmatmul.mubr.msk.f32.vlgmr.msra.gmra.mrb[8].mxu1 %vm750_vm2, %v740_v5 }
 0x3b4   :  { %3103 = vmatpush3.bf16.msk.msra.mxu1 %vm3745_vm6, %v3098_v11 }
 0x486   :  { %v3018_v20 = vpop.f32.mrb[8].mxu1 }
 0x487   :  { %v825_v21 = vpop.f32.mrb[9].mxu1  ;;  %v835_v23 = vmul.f32 0.17677669, %v3018_v20 }
 0x488   :  { %v834_v24 = vmul.f32 0.17677669, %v825_v21 }
 0x489   :  { %v837_v28 = vadd.f32 %v835_v23, %v3766_v25 }
 0x48a   :  { %v836_v26 = vadd.f32 %v834_v24, %v3761_v22 }
 0x48b   :  { %v843_v29 = vsel %vm842_vm8, %v837_v28, -inf }
 0x48c   :  { %v839_v27 = vsel %vm838_vm7, %v836_v26, -inf }
 0x48d   :  { %840 = vmax.xlane.f32.xlu1 %v839_v27 }
 0x491   :  { %844 = vmax.xlane.f32.xlu1 %v843_v29 }
 0x51a   :  { %v841_v30 = vpop.xlane.xlu1 %840 }
 0x51b   :  { %v846_v31 = vsub.f32 %v836_v26, %v841_v30 }
 0x51d   :  { %v848_v34 = vmul.f32 1.442695, %v846_v31 }
 0x51e   :  { %v845_v32 = vpop.xlane.xlu1 %844 }
 0x51f   :  { %v847_v33 = vsub.f32 %v837_v28, %v845_v32 }
 0x521   :  { %v850_v35 = vmul.f32 1.442695, %v847_v33 }
 0x523   :  { %3337 = vpow2.f32 %v850_v35  ;;  %v3260_v35 = vld [vmem:[%s4204_s6 + $0x18] sm:$0xff]  }
 0x524   :  { %3339 = vpow2.f32 %v848_v34  ;;  %v3259_v34 = vld [vmem:[%s4204_s6 + $0x10] sm:$0xff]  }
 0x52d   :  { %v3338_v37 = vpop.eup %3337 }
 0x52e   :  { %v855_v38 = vsel %vm842_vm8, %v3338_v37, 0.0  ;;  %v3340_v39 = vpop.eup %3339 }
 0x52f   :  { %856 = vadd.xlane.f32.xlu1 %v855_v38  ;;  %v852_v40 = vsel %vm838_vm7, %v3340_v39, 0.0 }
 0x533   :  { %853 = vadd.xlane.f32.xlu1 %v852_v40 }
 0x544   :  { %3154 = vrot.lane.b32.xlu1 %v3148_v9, %s3427_s2 }
 0x5bc   :  { %v857_v41 = vpop.xlane.xlu1 %856 }
 0x5bd   :  { %3341 = vrcp.f32 %v857_v41 }
 0x5c0   :  { %v854_v42 = vpop.xlane.xlu1 %853 }
 0x5c1   :  { %3343 = vrcp.f32 %v854_v42 }
 0x5c4   :  { %v3155_v43 = vpop.permute.xlu1 %3154 }
 0x5c5   :  { %v3157_v47 = vunpack.i.h.bf16 %v3155_v43  ;;  %v3156_v48 = vunpack.i.l.bf16 %v3155_v43 }
 0x5c7   :  { %v3104_v49 = vpack.c.bf16 %v3157_v47, %v3156_v48  ;;  %v3342_v51 = vpop.eup %3341 }
 0x5c8   :  { %v861_v54 = vmul.f32 %v3342_v51, %v3338_v37 }
 0x5c9   :  { %3106 = vmatprep.subr.msk.bf16.mxu1 %vm3741_vm4, %v3104_v49 }
 0x5cb   :  { %v3344_v52 = vpop.eup %3343 }
 0x5cc   :  { %v860_v53 = vmul.f32 %v3344_v52, %v3340_v39 }
 0x5ce   :  { %3023 = vmatprep.mubr.msk.f32.mxu1 %vm838_vm7, %v860_v53 }
 0x5cf   :  { %3024 = vmatmul.mubr.msk.f32.vlgmr.msra.gmra.mrb[10].mxu1 %vm838_vm7, %v861_v54 }
 0x5d0   :  { %3109 = vmatpush3.bf16.xpose.msk.msra.mxu1 %vm3741_vm4, %v3104_v49  ;;  %3030 = vmatprep.mubr.msk.f32.mxu1 %vm750_vm2, %v948_v55  ;;  %v1175_v49 = vrot.slane %v3717_v59, %v3709_v50 }
 0x5d1   :  { %3040 = vmatprep.subr.bf16.mxu1 %v3428_v8 }
 0x5d7   :  { %3031 = vmatmul.mubr.msk.f32.vlgmr.msra.gmra.mrb[12].mxu1 %vm750_vm2, %v950_v56 }
 0x5d8   :  { %3041 = vmatpush3.bf16.msra.mxu1 %v3257_v7  ;;  %3048 = vmatprep.mubr.msk.bf16.mxu1 %vm3429_vm9, %v3428_v8 }
 0x5d9   :  { %3042 = vmatprep.subr.bf16.mxu1 %v3428_v8 }
 0x6a2   :  { %v3783_v57 = vpop.f32.mrb[10].mxu1 }
 0x6a3   :  { %v3785_v58 = vpop.f32.mrb[11].mxu1 }
 0x6aa   :  { %v3032_v61 = vpop.f32.mrb[12].mxu1 }
 0x6ab   :  { %v1039_v62 = vmul.f32 0.17677669, %v3032_v61  ;;  %v1029_v63 = vpop.f32.mrb[13].mxu1 }
 0x6ac   :  { %v1038_v0 = vmul.f32 0.17677669, %v1029_v63 }
 0x6ad   :  { %v1041_v1 = vadd.f32 %v1039_v62, %v3766_v25 }
 0x6ae   :  { %v1040_v2 = vadd.f32 %v1038_v0, %v3761_v22 }
 0x6af   :  { %v1045_v3 = vsel %vm842_vm8, %v1041_v1, -inf }
 0x6b0   :  { %1046 = vmax.xlane.f32.xlu1 %v1045_v3  ;;  %v1042_v4 = vsel %vm838_vm7, %v1040_v2, -inf }
 0x6b1   :  { %1043 = vmax.xlane.f32.xlu0 %v1042_v4 }
 0x73d   :  { %v1047_v5 = vpop.xlane.xlu1 %1046 }
 0x73e   :  { %v1049_v6 = vsub.f32 %v1041_v1, %v1047_v5  ;;  %v1044_v9 = vpop.xlane.xlu0 %1043 }
 0x73f   :  { %v1048_v11 = vsub.f32 %v1040_v2, %v1044_v9  ;;  %v3263_v9 = vld [vmem:[%s4205_s7 + $0x4] ss:$8 sps:$4 sm:$0xff]  }
 0x740   :  { %v1052_v12 = vmul.f32 1.442695, %v1049_v6 }
 0x741   :  { %v1050_v14 = vmul.f32 1.442695, %v1048_v11  ;;  %v3261_v11 = vld [vmem:[%s4205_s7] ss:$8 sps:$4 sm:$0xff]  }
 0x742   :  { %3345 = vpow2.f32 %v1052_v12  ;;  %v3266_v12 = vld [vmem:[%s4205_s7 + $0x14] ss:$8 sps:$4 sm:$0xff]  }
 0x743   :  { %3347 = vpow2.f32 %v1050_v14  ;;  %v3264_v14 = vld [vmem:[%s4205_s7 + $0x10] ss:$8 sps:$4 sm:$0xff]  }
 0x74c   :  { %v3346_v16 = vpop.eup %3345 }
 0x74d   :  { %v1057_v18 = vsel %vm842_vm8, %v3346_v16, 0.0  ;;  %v3348_v20 = vpop.eup %3347 }
 0x74e   :  { %1058 = vadd.xlane.f32.xlu0 %v1057_v18  ;;  %v1054_v21 = vsel %vm838_vm7, %v3348_v20, 0.0  ;;  %v3267_v18 = vld [vmem:[%s4205_s7 + $0x20] ss:$8 sps:$4 sm:$0xff]  }
 0x752   :  { %1055 = vadd.xlane.f32.xlu0 %v1054_v21  ;;  %v3272_v21 = vld [vmem:[%s4205_s7 + $0x34] ss:$8 sps:$4 sm:$0xff]  }
 0x768   :  { %3159 = vrot.lane.b32.xlu0 %v3158_v10, %s3425_s3  ;;  %v3258_v10 = vld [vmem:[%s4204_s6 + $0x8] sm:$0xff]  }
 0x769   :  { %3043 = vmatpush3.bf16.msra.mxu1 %v3258_v10 }
 0x76a   :  { %3044 = vmatprep.subr.bf16.mxu1 %v3428_v8 }
 0x76d   :  { %3045 = vmatpush3.bf16.msra.mxu1 %v3259_v34 }
 0x76e   :  { %3046 = vmatprep.subr.bf16.mxu1 %v3428_v8 }
 0x771   :  { %3047 = vmatpush3.bf16.msra.mxu1 %v3260_v35 }
 0x772   :  { %1354 = vmatprep.subr.bf16.mxu1 %v3263_v9 }
 0x7db   :  { %v1059_v23 = vpop.xlane.xlu0 %1058 }
 0x7dc   :  { %3349 = vrcp.f32 %v1059_v23  ;;  %v3273_v23 = vld [vmem:[%s4206_s8 + $0x40] sm:$0xff]  }
 0x7df   :  { %v1056_v24 = vpop.xlane.xlu0 %1055 }
 0x7e0   :  { %3351 = vrcp.f32 %v1056_v24 }
 0x7e3   :  { %v3160_v26 = vpop.permute.xlu0 %3159 }
 0x7e4   :  { %v3162_v27 = vunpack.i.h.bf16 %v3160_v26  ;;  %v3161_v28 = vunpack.i.l.bf16 %v3160_v26 }
 0x7e6   :  { %v3110_v29 = vpack.c.bf16 %v3162_v27, %v3161_v28  ;;  %v3350_v30 = vpop.eup %3349 }
 0x7e7   :  { %v1063_v33 = vmul.f32 %v3350_v30, %v3346_v16  ;;  %v3269_v16 = vld [vmem:[%s4205_s7 + $0x24] ss:$8 sps:$4 sm:$0xff]  }
 0x7e8   :  { %3112 = vmatprep.subr.msk.bf16.mxu0 %vm3745_vm6, %v3110_v29 }
 0x7e9   :  { %3115 = vmatpush3.bf16.msk.msra.mxu0 %vm3745_vm6, %v3110_v29 }
 0x7ea   :  { %v3352_v31 = vpop.eup %3351 }
 0x7eb   :  { %v1062_v32 = vmul.f32 %v3352_v31, %v3348_v20  ;;  %v3270_v20 = vld [vmem:[%s4205_s7 + $0x30] ss:$8 sps:$4 sm:$0xff]   ;;  %v3873_v31 = vsub.s32 2, %v3696_v44 }
 0x7ed   :  { %3037 = vmatprep.mubr.msk.f32.mxu0 %vm838_vm7, %v1062_v32  ;;  %v1275_v32 = vrot.slane %v3704_v46, %v3873_v31 }
 0x7ee   :  { %3038 = vmatmul.mubr.msk.f32.vlgmr.msra.gmra.mrb[8].mxu0 %vm838_vm7, %v1063_v33  ;;  %v3878_v33 = vsub.s32 3, %v3696_v44 }
 0x7ef   :  { %1740 = vmatprep.mubr.bf16.mxu0 %v3423_v36 }
 0x8c1   :  { %v3039_v37 = vpop.f32.mrb[8].mxu0 }
 0x8c2   :  { %v1144_v38 = vpop.f32.mrb[9].mxu0 }
 0x8c3   :  { %v3163_v39 = vpack.i.bf16 %v3039_v37, %v1144_v38  ;;  %v1281_v38 = vrot.slane %v3704_v46, %v3878_v33  ;;  %v3277_v46 = vld [vmem:[%s4206_s8 + $0x50] sm:$0xff]  }
 0x8c5   :  { %3164 = vrot.lane.b32.xlu1 %v3163_v39, %s3427_s2 }
 0x937   :  { %v3165_v40 = vpop.permute.xlu1 %3164 }
 0x938   :  { %v3167_v41 = vunpack.i.h.bf16 %v3165_v40  ;;  %v3166_v42 = vunpack.i.l.bf16 %v3165_v40 }
 0x93a   :  { %v1162_v43 = vsel %vm750_vm2, %v3783_v57, %v3167_v41  ;;  %v1161_v47 = vsel %vm750_vm2, %v3785_v58, %v3166_v42  ;;  %v3274_v42 = vld [vmem:[%s4206_s8] sm:$0xff]  }
 0x93b   :  { %v1163_v48 = vpack.c.bf16 %v1162_v43, %v1161_v47  ;;  %v3275_v47 = vld [vmem:[%s4206_s8 + $0x48] sm:$0xff]  }
 0x93d   :  { %3049 = vmatmul.mubr.msk.bf16.vlgmr.msra.gmra.mrb[16].mxu1 %vm589_vm0, %v1163_v48  ;;  %v3276_v48 = vld [vmem:[%s4206_s8 + $0x8] sm:$0xff]  }
 0x93e   :  { %1386 = vmatprep.mubr.bf16.mxu1 %v3423_v36  ;;  %1355 = vmatpush1.bf16.msra.mxu1 %v3261_v11 }
 0x93f   :  { %1356 = vmatprep.subr.bf16.mxu1 %v3266_v12 }
 0x942   :  { %1357 = vmatpush1.bf16.msra.mxu1 %v3264_v14 }
 0x943   :  { %1358 = vmatprep.subr.bf16.mxu1 %v3269_v16 }
 0x946   :  { %1359 = vmatpush1.bf16.msra.mxu1 %v3267_v18 }
 0x947   :  { %1360 = vmatprep.subr.bf16.mxu1 %v3272_v21 }
 0x94a   :  { %1361 = vmatpush1.bf16.msra.mxu1 %v3270_v20 }
 0x94b   :  { %2947 = vmatprep.subr.bf16.mxu1 %v3273_v23 }
 0xa10   :  { %v1237_v51 = vpop.f32.mrb[16].mxu1 }
 0xa11   :  { %v1238_v52 = vadd.f32 %v1237_v51, %v1175_v49  ;;  %v3050_v53 = vpop.f32.mrb[17].mxu1  ;;  %v3279_v51 = vld [vmem:[%s4206_s8 + $0x58] sm:$0xff]  }
 0xa12   :  { %v1240_v54 = vpop.f32.mrb[18].mxu1  ;;  %v3281_v53 = vld [vmem:[%s4206_s8 + $0x60] sm:$0xff]  }
 0xa13   :  { %v3832_v55 = vadd.f32 %v1238_v52, %v3659_v13  ;;  %v1241_v56 = vadd.f32 %v1240_v54, %v1175_v49  ;;  %v3051_v57 = vpop.f32.mrb[19].mxu1  ;;  %v3278_v49 = vld [vmem:[%s4206_s8 + $0x10] sm:$0xff]   ;;  %v3280_v52 = vld [vmem:[%s4206_s8 + $0x18] sm:$0xff]   ;;  %v3282_v54 = vld [vmem:[%s4206_s8 + $0x20] sm:$0xff]  }
 0xa14   :  { %v3284_v57 = vld [vmem:[%s4206_s8 + $0x28] sm:$0xff]  }
 0xa15   :  { %v3835_v61 = vadd.f32 %v1241_v56, %v3661_v15  ;;  %v1246_v58 = vsel %vm589_vm0, %v3832_v55, 0.0  ;;  %v3283_v56 = vld [vmem:[%s4206_s8 + $0x68] sm:$0xff]  }
 0xa16   :  { %1247 = vadd.xlane.f32.xlu1 %v1246_v58  ;;  %v3285_v58 = vld [vmem:[%s4206_s8 + $0x70] sm:$0xff]  }
 0xa17   :  { %v1249_v62 = vsel %vm593_vm1, %v3835_v61, 0.0 }
 0xa18   :  { %1250 = vadd.xlane.f32.xlu0 %v1249_v62  ;;  %v3286_v62 = vld [vmem:[%s4206_s8 + $0x30] sm:$0xff]  }
 0xaa3   :  { %v1248_v63 = vpop.xlane.xlu1 %1247 }
 0xaa4   :  { %v1252_v0 = vmul.f32 0.015625, %v1248_v63  ;;  %v3287_v63 = vld [vmem:[%s4206_s8 + $0x78] sm:$0xff]  }
 0xaa5   :  { %v1251_v1 = vpop.xlane.xlu0 %1250 }
 0xaa6   :  { %v1254_v2 = vsub.f32 %v3832_v55, %v1252_v0  ;;  %v1253_v13 = vmul.f32 0.015625, %v1251_v1  ;;  %v3288_v0 = vld [vmem:[%s4206_s8 + $0x38] sm:$0xff]   ;;  %v1299_v1 = vsub.s32 6, %v3696_v44 }
 0xaa8   :  { %v1255_v3 = vsub.f32 %v3835_v61, %v1253_v13  ;;  %v1256_v4 = vmul.f32 %v1254_v2, %v1254_v2  ;;  %v1300_v13 = vrot.slane %v3717_v59, %v1299_v1 }
 0xaaa   :  { %v1258_v15 = vsel %vm589_vm0, %v1256_v4, 0.0  ;;  %v1257_v5 = vmul.f32 %v1255_v3, %v1255_v3  ;;  %v1310_v4 = vrot.slane %v1300_v13, %v3873_v31 }
 0xaab   :  { %1259 = vadd.xlane.f32.xlu0 %v1258_v15 }
 0xaac   :  { %v1261_v6 = vsel %vm593_vm1, %v1257_v5, 0.0 }
 0xaad   :  { %1262 = vadd.xlane.f32.xlu1 %v1261_v6 }
 0xb38   :  { %v1260_v24 = vpop.xlane.xlu0 %1259 }
 0xb39   :  { %v1264_v26 = vmul.f32 0.015625, %v1260_v24 }
 0xb3a   :  { %v1263_v27 = vpop.xlane.xlu1 %1262 }
 0xb3b   :  { %v1266_v28 = vadd.f32 1e-06, %v1264_v26  ;;  %v1265_v29 = vmul.f32 0.015625, %v1263_v27 }
 0xb3d   :  { %3353 = vrsqrt.f32 %v1266_v28  ;;  %v1267_v30 = vadd.f32 1e-06, %v1265_v29 }
 0xb3f   :  { %3355 = vrsqrt.f32 %v1267_v30 }
 0xb47   :  { %v3354_v7 = vpop.eup %3353 }
 0xb48   :  { %v1270_v10 = vmul.f32 %v3354_v7, %v1254_v2  ;;  %v1296_v2 = vrot.slane %v3717_v59, %v3873_v31 }
 0xb49   :  { %v3356_v34 = vpop.eup %3355 }
 0xb4a   :  { %v1276_v35 = vmul.f32 %v1275_v32, %v1270_v10  ;;  %v1271_v37 = vmul.f32 %v3356_v34, %v1255_v3  ;;  %v1306_v3 = vrot.slane %v1296_v2, %v3873_v31 }
 0xb4c   :  { %v1277_v39 = vmul.f32 %v1275_v32, %v1271_v37  ;;  %v1282_v40 = vadd.f32 %v1281_v38, %v1276_v35 }
 0xb4e   :  { %v1283_v41 = vadd.f32 %v1281_v38, %v1277_v39 }
 0xb50   :  { %v1284_v43 = vpack.c.bf16 %v1283_v41, %v1282_v40 }
 0xb52   :  { %2732 = vmatmul.mubr.msk.bf16.vlgmr.msra.gmra.mrb[20].mxu1 %vm589_vm0, %v1284_v43 }
 0xb53   :  { %2948 = vmatpush3.bf16.msra.mxu1 %v3274_v42 }
 0xb54   :  { %2949 = vmatprep.subr.bf16.mxu1 %v3275_v47 }
 0xb57   :  { %2950 = vmatpush3.bf16.msra.mxu1 %v3276_v48  ;;  %v1454_v48 = vrot.slane %v3717_v59, %v3878_v33 }
 0xb58   :  { %2951 = vmatprep.subr.bf16.mxu1 %v3277_v46 }
 0xb5b   :  { %2952 = vmatpush3.bf16.msra.mxu1 %v3278_v49 }
 0xb5c   :  { %2953 = vmatprep.subr.bf16.mxu1 %v3279_v51 }
 0xb5f   :  { %2954 = vmatpush3.bf16.msra.mxu1 %v3280_v52 }
 0xb60   :  { %2955 = vmatprep.subr.bf16.mxu1 %v3281_v53 }
 0xb63   :  { %2956 = vmatpush3.bf16.msra.mxu1 %v3282_v54 }
 0xb64   :  { %2957 = vmatprep.subr.bf16.mxu1 %v3283_v56 }
 0xb67   :  { %2958 = vmatpush3.bf16.msra.mxu1 %v3284_v57 }
 0xb68   :  { %2959 = vmatprep.subr.bf16.mxu1 %v3285_v58 }
 0xb6b   :  { %2960 = vmatpush3.bf16.msra.mxu1 %v3286_v62 }
 0xb6c   :  { %2961 = vmatprep.subr.bf16.mxu1 %v3287_v63 }
 0xb6f   :  { %2962 = vmatpush3.bf16.msra.mxu1 %v3288_v0 }
 0xc25   :  { %v1388_v15 = vpop.f32.mrb[20].mxu1 }
 0xc26   :  { %v1389_v5 = vadd.f32 %v1388_v15, %v1306_v3  ;;  %v1390_v6 = vpop.f32.mrb[21].mxu1 }
 0xc27   :  { %v1391_v9 = vadd.f32 %v1390_v6, %v1310_v4  ;;  %v1392_v11 = vpop.f32.mrb[22].mxu1  ;;  %v3291_v6 = vld [vmem:[%s4203_s5 + $0x44] ss:$8 sps:$4 sm:$0xff]  }
 0xc28   :  { %v1401_v12 = vmul.f32 0.70710677, %v1389_v5  ;;  %v1393_v14 = vadd.f32 %v1392_v11, %v1306_v3  ;;  %v1394_v16 = vpop.f32.mrb[23].mxu1  ;;  %v1397_v32 = vmul.f32 0.5, %v1389_v5  ;;  %1708 = vmatprep.subr.bf16.mxu0 %v3291_v6  ;;  %v3294_v11 = vld [vmem:[%s4203_s5 + $0x54] ss:$8 sps:$4 sm:$0xff]  }
 0xc29   :  { %v1402_v18 = vmul.f32 0.70710677, %v1391_v9  ;;  %v1395_v20 = vadd.f32 %v1394_v16, %v1310_v4  ;;  %v1398_v34 = vmul.f32 0.5, %v1391_v9  ;;  %v3289_v9 = vld [vmem:[%s4203_s5 + $0x40] ss:$8 sps:$4 sm:$0xff]  }
 0xc2a   :  { %3357 = verf.f32 %v1401_v12  ;;  %v1403_v21 = vmul.f32 0.70710677, %v1393_v14  ;;  %v1399_v7 = vmul.f32 0.5, %v1393_v14  ;;  %1709 = vmatpush1.bf16.msra.mxu0 %v3289_v9  ;;  %v3292_v12 = vld [vmem:[%s4203_s5 + $0x50] ss:$8 sps:$4 sm:$0xff]  }
 0xc2b   :  { %3359 = verf.f32 %v1402_v18  ;;  %v1404_v23 = vmul.f32 0.70710677, %v1395_v20  ;;  %v1400_v35 = vmul.f32 0.5, %v1395_v20  ;;  %1710 = vmatprep.subr.bf16.mxu0 %v3294_v11  ;;  %v3297_v14 = vld [vmem:[%s4203_s5 + $0x64] ss:$8 sps:$4 sm:$0xff]  }
 0xc2c   :  { %3361 = verf.f32 %v1403_v21  ;;  %v3295_v16 = vld [vmem:[%s4203_s5 + $0x60] ss:$8 sps:$4 sm:$0xff]   ;;  %v3298_v18 = vld [vmem:[%s4203_s5 + $0x70] ss:$8 sps:$4 sm:$0xff]   ;;  %v3300_v20 = vld [vmem:[%s4203_s5 + $0x74] ss:$8 sps:$4 sm:$0xff]  }
 0xc2d   :  { %3363 = verf.f32 %v1404_v23 }
 0xc2e   :  { %1711 = vmatpush1.bf16.msra.mxu0 %v3292_v12 }
 0xc2f   :  { %1712 = vmatprep.subr.bf16.mxu0 %v3297_v14 }
 0xc32   :  { %1713 = vmatpush1.bf16.msra.mxu0 %v3295_v16 }
 0xc33   :  { %1714 = vmatprep.subr.bf16.mxu0 %v3300_v20 }
 0xc34   :  { %v3358_v24 = vpop.eup %3357 }
 0xc35   :  { %v3360_v26 = vpop.eup %3359  ;;  %v1409_v27 = vadd.f32 1.0, %v3358_v24 }
 0xc36   :  { %v3362_v28 = vpop.eup %3361  ;;  %v1410_v29 = vadd.f32 1.0, %v3360_v26  ;;  %1715 = vmatpush1.bf16.msra.mxu0 %v3298_v18 }
 0xc37   :  { %v3364_v30 = vpop.eup %3363  ;;  %v1411_v10 = vadd.f32 1.0, %v3362_v28  ;;  %v1413_v38 = vmul.f32 %v1409_v27, %v1397_v32 }
 0xc38   :  { %v1412_v37 = vadd.f32 1.0, %v3364_v30  ;;  %v1414_v40 = vmul.f32 %v1410_v29, %v1398_v34  ;;  %v3979_v29 = vld [vmem:[%s4202_s4 + $0x4] sm:$0xf] }
 0xc39   :  { %v1415_v39 = vmul.f32 %v1411_v10, %v1399_v7  ;;  %v1627_v30 = vrot.slane %v3979_v29, %v3699_v45 }
 0xc3a   :  { %v1416_v41 = vmul.f32 %v1412_v37, %v1400_v35  ;;  %v1633_v37 = vrot.slane %v3979_v29, %v3709_v50 }
 0xc3b   :  { %v1417_v42 = vpack.c.bf16 %v1415_v39, %v1413_v38 }
 0xc3c   :  { %v1418_v43 = vpack.c.bf16 %v1416_v41, %v1414_v40 }
 0xc3e   :  { %1583 = vmatprep.mubr.bf16.mxu1 %v1418_v43 }
 0xc3f   :  { %1584 = vmatmul.mubr.bf16.vlgmr.msra.gmra.mrb[24].mxu1 %v1417_v42  ;;  %v3989_v42 = vld [vmem:[%s4207_s9 + $0x8] sm:$0xff] }
 0xc40   :  { %v1650_v43 = vrot.slane %v3989_v42, %v3699_v45 }
 0xd12   :  { %v2963_v47 = vpop.f32.mrb[24].mxu1 }
 0xd13   :  { %v2964_v46 = vpop.f32.mrb[25].mxu1 }
 0xd14   :  { %v2965_v49 = vadd.f32 %v2964_v46, %v2963_v47  ;;  %v2966_v51 = vpop.f32.mrb[26].mxu1  ;;  %v1654_v47 = vrot.slane %v3989_v42, %v646_v60 }
 0xd15   :  { %v2967_v52 = vpop.f32.mrb[27].mxu1 }
 0xd16   :  { %v1586_v53 = vadd.f32 %v2965_v49, %v1454_v48  ;;  %v2968_v54 = vadd.f32 %v2967_v52, %v2966_v51  ;;  %v1664_v49 = vrot.slane %v1654_v47, %v3699_v45 }
 0xd18   :  { %v3939_v56 = vadd.f32 %v1586_v53, %v3832_v55  ;;  %v1589_v57 = vadd.f32 %v2968_v54, %v1454_v48  ;;  %v1660_v48 = vrot.slane %v1650_v43, %v3699_v45 }
 0xd1a   :  { %v3942_v58 = vadd.f32 %v1589_v57, %v3835_v61  ;;  %v1598_v62 = vsel %vm589_vm0, %v3939_v56, 0.0 }
 0xd1b   :  { %1599 = vadd.xlane.f32.xlu0 %v1598_v62 }
 0xd1c   :  { %v1601_v59 = vsel %vm593_vm1, %v3942_v58, 0.0 }
 0xd1d   :  { %1602 = vadd.xlane.f32.xlu1 %v1601_v59 }
 0xda8   :  { %v1600_v63 = vpop.xlane.xlu0 %1599 }
 0xda9   :  { %v1604_v0 = vmul.f32 0.015625, %v1600_v63 }
 0xdaa   :  { %v1603_v2 = vpop.xlane.xlu1 %1602 }
 0xdab   :  { %v1606_v13 = vsub.f32 %v3939_v56, %v1604_v0  ;;  %v1605_v3 = vmul.f32 0.015625, %v1603_v2 }
 0xdad   :  { %v1607_v55 = vsub.f32 %v3942_v58, %v1605_v3  ;;  %v1608_v4 = vmul.f32 %v1606_v13, %v1606_v13 }
 0xdaf   :  { %v1610_v61 = vsel %vm589_vm0, %v1608_v4, 0.0  ;;  %v1609_v15 = vmul.f32 %v1607_v55, %v1607_v55 }
 0xdb0   :  { %1611 = vadd.xlane.f32.xlu0 %v1610_v61 }
 0xdb1   :  { %v1613_v5 = vsel %vm593_vm1, %v1609_v15, 0.0 }
 0xdb2   :  { %1614 = vadd.xlane.f32.xlu1 %v1613_v5 }
 0xe3d   :  { %v1612_v21 = vpop.xlane.xlu0 %1611 }
 0xe3e   :  { %v1616_v23 = vmul.f32 0.015625, %v1612_v21 }
 0xe3f   :  { %v1615_v24 = vpop.xlane.xlu1 %1614 }
 0xe40   :  { %v1618_v26 = vadd.f32 1e-06, %v1616_v23  ;;  %v1617_v27 = vmul.f32 0.015625, %v1615_v24 }
 0xe42   :  { %3365 = vrsqrt.f32 %v1618_v26  ;;  %v1619_v28 = vadd.f32 1e-06, %v1617_v27 }
 0xe44   :  { %3367 = vrsqrt.f32 %v1619_v28 }
 0xe4c   :  { %v3366_v32 = vpop.eup %3365 }
 0xe4d   :  { %v1622_v7 = vmul.f32 %v3366_v32, %v1606_v13 }
 0xe4e   :  { %v3368_v10 = vpop.eup %3367 }
 0xe4f   :  { %v1628_v34 = vmul.f32 %v1627_v30, %v1622_v7  ;;  %v1623_v35 = vmul.f32 %v3368_v10, %v1607_v55 }
 0xe51   :  { %v1629_v38 = vmul.f32 %v1627_v30, %v1623_v35  ;;  %v1634_v39 = vadd.f32 %v1633_v37, %v1628_v34 }
 0xe53   :  { %v1635_v40 = vadd.f32 %v1633_v37, %v1629_v38 }
 0xe55   :  { %v1636_v41 = vpack.c.bf16 %v1635_v40, %v1634_v39 }
 0xe57   :  { %2767 = vmatmul.mubr.msk.bf16.vlgmr.msra.gmra.mrb[12].mxu0 %vm589_vm0, %v1636_v41 }
 0xf2a   :  { %v1742_v46 = vpop.f32.mrb[12].mxu0 }
 0xf2b   :  { %v1743_v51 = vadd.f32 %v1742_v46, %v1660_v48  ;;  %v1744_v52 = vpop.f32.mrb[13].mxu0 }
 0xf2c   :  { %v1746_v53 = vpop.f32.mrb[14].mxu0  ;;  %v3999_v62 = vadd.f32 %v1744_v52, %v1664_v49 }
 0xf2d   :  { %v1747_v54 = vadd.f32 %v1746_v53, %v1660_v48  ;;  %v1748_v57 = vpop.f32.mrb[15].mxu0  ;;  %3056 = vmatprep.mubr.msk.f32.mxu0 %vm750_vm2, %v1743_v51 }
 0xf2e   :  { %v4001_v59 = vadd.f32 %v1748_v57, %v1664_v49 }
 0xf2f   :  { %v3168_v63 = vpack.i.bf16 %v1747_v54, %v1743_v51 }
 0xf30   :  { %v3178_v60 = vpack.i.bf16 %v4001_v59, %v3999_v62  ;;  %v3122_v0 = vpack.c.bf16 %v4001_v59, %v3999_v62  ;;  %v3301_v62 = vld [vmem:[%s4204_s6 + $0x20] sm:$0xff]   ;;  %v3302_v59 = vld [vmem:[%s4204_s6 + $0x28] sm:$0xff]  }
 0xf31   :  { %3169 = vrot.lane.b32.xlu0 %v3168_v63, %s3424_s13 }
 0xf35   :  { %1950 = vrot.lane.b32.xlu0 %v1743_v51, %s3425_s3 }
 0xf39   :  { %1952 = vrot.lane.b32.xlu0 %v1747_v54, %s3425_s3 }
 0xfa3   :  { %v3170_v2 = vpop.permute.xlu0 %3169 }
 0xfa4   :  { %v3172_v13 = vunpack.i.h.bf16 %v3170_v2  ;;  %v3171_v3 = vunpack.i.l.bf16 %v3170_v2 }
 0xfa6   :  { %v3116_v55 = vpack.c.bf16 %v3172_v13, %v3171_v3 }
 0xfa7   :  { %v1951_v41 = vpop.permute.xlu0 %1950 }
 0xfa8   :  { %3118 = vmatprep.subr.msk.bf16.mxu0 %vm3741_vm4, %v3116_v55 }
 0xfa9   :  { %3121 = vmatpush3.bf16.xpose.msk.msra.mxu0 %vm3741_vm4, %v3116_v55 }
 0xfaa   :  { %3124 = vmatprep.subr.msk.bf16.mxu0 %vm3745_vm6, %v3122_v0 }
 0xfab   :  { %v1953_v43 = vpop.permute.xlu0 %1952 }
 0xfb0   :  { %3057 = vmatmul.mubr.msk.f32.vlgmr.msra.gmra.mrb[10].mxu0 %vm750_vm2, %v1747_v54 }
 0xfb1   :  { %3127 = vmatpush3.bf16.msk.msra.mxu0 %vm3745_vm6, %v3122_v0 }
0x1083   :  { %v3058_v4 = vpop.f32.mrb[10].mxu0 }
0x1084   :  { %v1831_v61 = vpop.f32.mrb[11].mxu0  ;;  %v1841_v15 = vmul.f32 0.17677669, %v3058_v4 }
0x1085   :  { %v1840_v5 = vmul.f32 0.17677669, %v1831_v61 }
0x1086   :  { %v1843_v11 = vadd.f32 %v1841_v15, %v3766_v25 }
0x1087   :  { %v1842_v6 = vadd.f32 %v1840_v5, %v3761_v22 }
0x1088   :  { %v1847_v12 = vsel %vm842_vm8, %v1843_v11, -inf }
0x1089   :  { %v1844_v9 = vsel %vm838_vm7, %v1842_v6, -inf }
0x108a   :  { %1845 = vmax.xlane.f32.xlu1 %v1844_v9 }
0x108e   :  { %1848 = vmax.xlane.f32.xlu1 %v1847_v12 }
0x1117   :  { %v1846_v14 = vpop.xlane.xlu1 %1845 }
0x1118   :  { %v1850_v16 = vsub.f32 %v1842_v6, %v1846_v14 }
0x111a   :  { %v1852_v21 = vmul.f32 1.442695, %v1850_v16 }
0x111b   :  { %v1849_v18 = vpop.xlane.xlu1 %1848 }
0x111c   :  { %v1851_v20 = vsub.f32 %v1843_v11, %v1849_v18 }
0x111e   :  { %v1854_v23 = vmul.f32 1.442695, %v1851_v20 }
0x1120   :  { %3369 = vpow2.f32 %v1854_v23 }
0x1121   :  { %3371 = vpow2.f32 %v1852_v21 }
0x112a   :  { %v3370_v24 = vpop.eup %3369 }
0x112b   :  { %v1859_v26 = vsel %vm842_vm8, %v3370_v24, 0.0  ;;  %v3372_v27 = vpop.eup %3371 }
0x112c   :  { %1860 = vadd.xlane.f32.xlu1 %v1859_v26  ;;  %v1856_v28 = vsel %vm838_vm7, %v3372_v27, 0.0 }
0x1130   :  { %1857 = vadd.xlane.f32.xlu1 %v1856_v28 }
0x1141   :  { %3174 = vrot.lane.b32.xlu1 %v3168_v63, %s3427_s2 }
0x11b9   :  { %v1861_v30 = vpop.xlane.xlu1 %1860 }
0x11ba   :  { %3373 = vrcp.f32 %v1861_v30 }
0x11bd   :  { %v1858_v32 = vpop.xlane.xlu1 %1857 }
0x11be   :  { %3375 = vrcp.f32 %v1858_v32  ;;  %v2179_v32 = vrot.slane %v3989_v42, %v3709_v50 }
0x11c1   :  { %v3175_v7 = vpop.permute.xlu1 %3174 }
0x11c2   :  { %v3177_v10 = vunpack.i.h.bf16 %v3175_v7  ;;  %v3176_v34 = vunpack.i.l.bf16 %v3175_v7 }
0x11c4   :  { %v3128_v35 = vpack.c.bf16 %v3177_v10, %v3176_v34  ;;  %v3374_v37 = vpop.eup %3373 }
0x11c5   :  { %v1865_v40 = vmul.f32 %v3374_v37, %v3370_v24 }
0x11c6   :  { %3130 = vmatprep.subr.msk.bf16.mxu0 %vm3741_vm4, %v3128_v35 }
0x11c8   :  { %v3376_v38 = vpop.eup %3375 }
0x11c9   :  { %v1864_v39 = vmul.f32 %v3376_v38, %v3372_v27 }
0x11cb   :  { %3063 = vmatprep.mubr.msk.f32.mxu0 %vm838_vm7, %v1864_v39 }
0x11cc   :  { %3064 = vmatmul.mubr.msk.f32.vlgmr.msra.gmra.mrb[16].mxu0 %vm838_vm7, %v1865_v40 }
0x11cd   :  { %3133 = vmatpush3.bf16.xpose.msk.msra.mxu0 %vm3741_vm4, %v3128_v35  ;;  %3070 = vmatprep.mubr.msk.f32.mxu0 %vm750_vm2, %v1951_v41 }
0x11ce   :  { %3080 = vmatprep.subr.bf16.mxu0 %v3428_v8 }
0x11d4   :  { %3071 = vmatmul.mubr.msk.f32.vlgmr.msra.gmra.mrb[18].mxu0 %vm750_vm2, %v1953_v43 }
0x11d5   :  { %3088 = vmatprep.mubr.msk.bf16.mxu0 %vm3429_vm9, %v3428_v8  ;;  %3081 = vmatpush3.bf16.msra.mxu0 %v3301_v62 }
0x11d6   :  { %3082 = vmatprep.subr.bf16.mxu0 %v3428_v8 }
0x11d9   :  { %3083 = vmatpush3.bf16.msra.mxu0 %v3302_v59 }
0x11da   :  { %3084 = vmatprep.subr.bf16.mxu0 %v3428_v8 }
0x11dd   :  { %3085 = vmatpush3.bf16.msra.mxu0 %v3303_v19  ;;  %v2285_v19 = vrot.slane %v3979_v29, %v3878_v33 }
0x11de   :  { %3086 = vmatprep.subr.bf16.mxu0 %v3428_v8 }
0x129f   :  { %v4037_v47 = vpop.f32.mrb[16].mxu0 }
0x12a0   :  { %v4039_v48 = vpop.f32.mrb[17].mxu0 }
0x12a7   :  { %v3072_v46 = vpop.f32.mrb[18].mxu0 }
0x12a8   :  { %v2042_v49 = vmul.f32 0.17677669, %v3072_v46  ;;  %v2032_v51 = vpop.f32.mrb[19].mxu0 }
0x12a9   :  { %v2041_v52 = vmul.f32 0.17677669, %v2032_v51 }
0x12aa   :  { %v2044_v17 = vadd.f32 %v2042_v49, %v3766_v25 }
0x12ab   :  { %v2043_v53 = vadd.f32 %v2041_v52, %v3761_v22 }
0x12ac   :  { %v2048_v54 = vsel %vm842_vm8, %v2044_v17, -inf }
0x12ad   :  { %2049 = vmax.xlane.f32.xlu1 %v2048_v54  ;;  %v2045_v57 = vsel %vm838_vm7, %v2043_v53, -inf }
0x12ae   :  { %2046 = vmax.xlane.f32.xlu0 %v2045_v57  ;;  %v3305_v57 = vld [vmem:[%s4205_s7 + $0x40] ss:$8 sps:$4 sm:$0xff]  }
0x133a   :  { %v2050_v63 = vpop.xlane.xlu1 %2049 }
0x133b   :  { %v2052_v0 = vsub.f32 %v2044_v17, %v2050_v63  ;;  %v2047_v2 = vpop.xlane.xlu0 %2046  ;;  %v3310_v63 = vld [vmem:[%s4205_s7 + $0x54] ss:$8 sps:$4 sm:$0xff]  }
0x133c   :  { %v2051_v13 = vsub.f32 %v2043_v53, %v2047_v2  ;;  %v3313_v2 = vld [vmem:[%s4205_s7 + $0x64] ss:$8 sps:$4 sm:$0xff]  }
0x133d   :  { %v2055_v3 = vmul.f32 1.442695, %v2052_v0  ;;  %v3308_v0 = vld [vmem:[%s4205_s7 + $0x50] ss:$8 sps:$4 sm:$0xff]  }
0x133e   :  { %v2053_v55 = vmul.f32 1.442695, %v2051_v13  ;;  %v3311_v13 = vld [vmem:[%s4205_s7 + $0x60] ss:$8 sps:$4 sm:$0xff]  }
0x133f   :  { %3377 = vpow2.f32 %v2055_v3  ;;  %v3314_v3 = vld [vmem:[%s4205_s7 + $0x70] ss:$8 sps:$4 sm:$0xff]  }
0x1340   :  { %3379 = vpow2.f32 %v2053_v55  ;;  %v3316_v55 = vld [vmem:[%s4205_s7 + $0x74] ss:$8 sps:$4 sm:$0xff]  }
0x1349   :  { %v3378_v4 = vpop.eup %3377 }
0x134a   :  { %v2060_v61 = vsel %vm842_vm8, %v3378_v4, 0.0  ;;  %v3380_v25 = vpop.eup %3379 }
0x134b   :  { %2061 = vadd.xlane.f32.xlu0 %v2060_v61  ;;  %v2057_v22 = vsel %vm838_vm7, %v3380_v25, 0.0  ;;  %v3318_v61 = vld [vmem:[%s4206_s8 + $0x80] sm:$0xff]  }
0x134f   :  { %2058 = vadd.xlane.f32.xlu0 %v2057_v22  ;;  %v3320_v22 = vld [vmem:[%s4206_s8 + $0x88] sm:$0xff]  }
0x1365   :  { %3179 = vrot.lane.b32.xlu0 %v3178_v60, %s3425_s3  ;;  %s3430_s3 = smov [#allocation2]  }
0x1366   :  { %s2634_s30 = sshll.u32 %s3430_s3, 4  ;;  %s2635_s30 = int_to_ptr.vmem [resolvable:$true] %s2634_s30 }
0x1367   :  { %s3399_s12 = scalar_lea.vmem %s2635_s30, 32  ;;  %p3404_p1 = scmp.lt.s32.totalorder %s2635_s30, %s2635_s30 }
0x1368   :  { %p3400_p0 = scmp.ne.s32.totalorder %s2635_s30, %s3399_s12  ;;  %p3405_p2 = scmp.lt.s32.totalorder %s3399_s12, %s3399_s12 }
0x136a   :  { %p3406_p3 = por %p3405_p2, %p3404_p1 }
0x136c   :  { %p3407_p4 = pnand %p3406_p3, %p3400_p0 }
0x13d8   :  { %v2062_v15 = vpop.xlane.xlu0 %2061 }
0x13d9   :  { %3381 = vrcp.f32 %v2062_v15 }
0x13dc   :  { %v2059_v5 = vpop.xlane.xlu0 %2058 }
0x13dd   :  { %3383 = vrcp.f32 %v2059_v5 }
0x13e0   :  { %v3180_v6 = vpop.permute.xlu0 %3179 }
0x13e1   :  { %v3182_v9 = vunpack.i.h.bf16 %v3180_v6  ;;  %v3181_v11 = vunpack.i.l.bf16 %v3180_v6 }
0x13e3   :  { %v3134_v12 = vpack.c.bf16 %v3182_v9, %v3181_v11  ;;  %v3382_v14 = vpop.eup %3381 }
0x13e4   :  { %v2066_v20 = vmul.f32 %v3382_v14, %v3378_v4  ;;  %v3317_v4 = vld [vmem:[%s4206_s8 + $0xc0] sm:$0xff]   ;;  %v2279_v14 = vrot.slane %v3979_v29, %v3873_v31  ;;  %v3323_v29 = vld [vmem:[%s4206_s8 + $0xd8] sm:$0xff]  }
0x13e5   :  { %3136 = vmatprep.subr.msk.bf16.mxu1 %vm3745_vm6, %v3134_v12 }
0x13e6   :  { %3139 = vmatpush3.bf16.msk.msra.mxu1 %vm3745_vm6, %v3134_v12 }
0x13e7   :  { %v3384_v16 = vpop.eup %3383 }
0x13e8   :  { %v2065_v18 = vmul.f32 %v3384_v16, %v3380_v25  ;;  %v3319_v25 = vld [vmem:[%s4206_s8 + $0xc8] sm:$0xff]  }
0x13ea   :  { %3077 = vmatprep.mubr.msk.f32.mxu1 %vm838_vm7, %v2065_v18 }
0x13eb   :  { %3078 = vmatmul.mubr.msk.f32.vlgmr.msra.gmra.mrb[14].mxu1 %vm838_vm7, %v2066_v20 }
0x13ec   :  { %2391 = vmatprep.mubr.bf16.mxu1 %v3423_v36  ;;  %v3304_v36 = vld [vmem:[%s4204_s6 + $0x38] sm:$0xff]  }
0x13ed   :  { %3087 = vmatpush3.bf16.msra.mxu0 %v3304_v36 }
0x13ee   :  { %2990 = vmatprep.subr.bf16.mxu0 %v3317_v4 }
0x14be   :  { %v3079_v60 = vpop.f32.mrb[14].mxu1 }
0x14bf   :  { %v2147_v21 = vpop.f32.mrb[15].mxu1 }
0x14c0   :  { %v3183_v23 = vpack.i.bf16 %v3079_v60, %v2147_v21 }
0x14c2   :  { %3184 = vrot.lane.b32.xlu1 %v3183_v23, %s3427_s2 }
0x1534   :  { %v3185_v24 = vpop.permute.xlu1 %3184 }
0x1535   :  { %v3187_v26 = vunpack.i.h.bf16 %v3185_v24  ;;  %v3186_v27 = vunpack.i.l.bf16 %v3185_v24  ;;  %v3321_v24 = vld [vmem:[%s4206_s8 + $0xd0] sm:$0xff]  }
0x1537   :  { %v2165_v28 = vsel %vm750_vm2, %v4037_v47, %v3187_v26  ;;  %v2164_v30 = vsel %vm750_vm2, %v4039_v48, %v3186_v27  ;;  %v3322_v26 = vld [vmem:[%s4206_s8 + $0x90] sm:$0xff]   ;;  %v3324_v27 = vld [vmem:[%s4206_s8 + $0x98] sm:$0xff]  }
0x1538   :  { %v2166_v8 = vpack.c.bf16 %v2165_v28, %v2164_v30  ;;  %v3325_v28 = vld [vmem:[%s4206_s8 + $0xe0] sm:$0xff]  }
0x1539   :  { %v3326_v30 = vld [vmem:[%s4206_s8 + $0xa0] sm:$0xff]  }
0x153a   :  { %3089 = vmatmul.mubr.msk.bf16.vlgmr.msra.gmra.mrb[20].mxu0 %vm589_vm0, %v2166_v8  ;;  %v3327_v8 = vld [vmem:[%s4206_s8 + $0xe8] sm:$0xff]  }
0x153b   :  { %2991 = vmatpush3.bf16.msra.mxu0 %v3318_v61 }
0x153c   :  { %2992 = vmatprep.subr.bf16.mxu0 %v3319_v25 }
0x153f   :  { %2993 = vmatpush3.bf16.msra.mxu0 %v3320_v22 }
0x1540   :  { %2994 = vmatprep.subr.bf16.mxu0 %v3321_v24 }
0x1543   :  { %2995 = vmatpush3.bf16.msra.mxu0 %v3322_v26 }
0x1544   :  { %2996 = vmatprep.subr.bf16.mxu0 %v3323_v29 }
0x1547   :  { %2997 = vmatpush3.bf16.msra.mxu0 %v3324_v27 }
0x1548   :  { %2998 = vmatprep.subr.bf16.mxu0 %v3325_v28 }
0x154b   :  { %2999 = vmatpush3.bf16.msra.mxu0 %v3326_v30 }
0x154c   :  { %3000 = vmatprep.subr.bf16.mxu0 %v3327_v8 }
0x160d   :  { %v2241_v7 = vpop.f32.mrb[20].mxu0 }
0x160e   :  { %v2242_v10 = vadd.f32 %v2241_v7, %v2179_v32  ;;  %v3090_v34 = vpop.f32.mrb[21].mxu0  ;;  %v3329_v7 = vld [vmem:[%s4206_s8 + $0xf0] sm:$0xff]  }
0x160f   :  { %v2244_v35 = vpop.f32.mrb[22].mxu0  ;;  %v3331_v34 = vld [vmem:[%s4206_s8 + $0xf8] sm:$0xff]  }
0x1610   :  { %v4082_v37 = vadd.f32 %v2242_v10, %v3939_v56  ;;  %v2245_v38 = vadd.f32 %v2244_v35, %v2179_v32  ;;  %v3091_v39 = vpop.f32.mrb[23].mxu0  ;;  %v3328_v32 = vld [vmem:[%s4206_s8 + $0xa8] sm:$0xff]   ;;  %v3330_v10 = vld [vmem:[%s4206_s8 + $0xb0] sm:$0xff]   ;;  %v3332_v35 = vld [vmem:[%s4206_s8 + $0xb8] sm:$0xff]  }
0x1611   :  { %3001 = vmatpush3.bf16.msra.mxu0 %v3328_v32  ;;  %v2305_v39 = vrot.slane %v3989_v42, %v1299_v1 }
0x1612   :  { %v2250_v40 = vsel %vm589_vm0, %v4082_v37, 0.0  ;;  %v2249_v41 = vadd.f32 %v2245_v38, %v3942_v58  ;;  %v3307_v58 = vld [vmem:[%s4205_s7 + $0x44] ss:$8 sps:$4 sm:$0xff]   ;;  %3002 = vmatprep.subr.bf16.mxu0 %v3329_v7  ;;  %v2301_v38 = vrot.slane %v3989_v42, %v3873_v31 }
0x1613   :  { %2251 = vadd.xlane.f32.xlu1 %v2250_v40  ;;  %2359 = vmatprep.subr.bf16.mxu1 %v3307_v58 }
0x1614   :  { %v2253_v43 = vsel %vm593_vm1, %v2249_v41, 0.0  ;;  %2360 = vmatpush1.bf16.msra.mxu1 %v3305_v57  ;;  %v2311_v40 = vrot.slane %v2301_v38, %v3873_v31 }
0x1615   :  { %2254 = vadd.xlane.f32.xlu0 %v2253_v43  ;;  %2361 = vmatprep.subr.bf16.mxu1 %v3310_v63 }
0x1616   :  { %3003 = vmatpush3.bf16.msra.mxu0 %v3330_v10 }
0x1617   :  { %3004 = vmatprep.subr.bf16.mxu0 %v3331_v34 }
0x1618   :  { %2362 = vmatpush1.bf16.msra.mxu1 %v3308_v0 }
0x1619   :  { %2363 = vmatprep.subr.bf16.mxu1 %v3313_v2 }
0x161a   :  { %3005 = vmatpush3.bf16.msra.mxu0 %v3332_v35 }
0x161c   :  { %2364 = vmatpush1.bf16.msra.mxu1 %v3311_v13 }
0x161d   :  { %2365 = vmatprep.subr.bf16.mxu1 %v3316_v55 }
0x1620   :  { %2366 = vmatpush1.bf16.msra.mxu1 %v3314_v3 }
0x16a0   :  { %v2252_v47 = vpop.xlane.xlu1 %2251 }
0x16a1   :  { %v2256_v48 = vmul.f32 0.015625, %v2252_v47 }
0x16a2   :  { %v2255_v46 = vpop.xlane.xlu0 %2254 }
0x16a3   :  { %v2258_v49 = vsub.f32 %v4082_v37, %v2256_v48  ;;  %v2257_v51 = vmul.f32 0.015625, %v2255_v46 }
0x16a5   :  { %v2259_v52 = vsub.f32 %v2249_v41, %v2257_v51  ;;  %v2260_v56 = vmul.f32 %v2258_v49, %v2258_v49  ;;  %v2315_v41 = vrot.slane %v2305_v39, %v3873_v31 }
0x16a7   :  { %v2262_v17 = vsel %vm589_vm0, %v2260_v56, 0.0  ;;  %v2261_v53 = vmul.f32 %v2259_v52, %v2259_v52 }
0x16a8   :  { %2263 = vadd.xlane.f32.xlu0 %v2262_v17 }
0x16a9   :  { %v2265_v54 = vsel %vm593_vm1, %v2261_v53, 0.0 }
0x16aa   :  { %2266 = vadd.xlane.f32.xlu1 %v2265_v54 }
0x1735   :  { %v2264_v15 = vpop.xlane.xlu0 %2263 }
0x1736   :  { %v2268_v5 = vmul.f32 0.015625, %v2264_v15 }
0x1737   :  { %v2267_v6 = vpop.xlane.xlu1 %2266 }
0x1738   :  { %v2270_v9 = vadd.f32 1e-06, %v2268_v5  ;;  %v2269_v11 = vmul.f32 0.015625, %v2267_v6 }
0x173a   :  { %3385 = vrsqrt.f32 %v2270_v9  ;;  %v2271_v12 = vadd.f32 1e-06, %v2269_v11 }
0x173c   :  { %3387 = vrsqrt.f32 %v2271_v12  ;;  %v2460_v12 = vrot.slane %v3989_v42, %v3878_v33 }
0x1744   :  { %v3386_v16 = vpop.eup %3385 }
0x1745   :  { %v2274_v18 = vmul.f32 %v3386_v16, %v2258_v49 }
0x1746   :  { %v3388_v20 = vpop.eup %3387 }
0x1747   :  { %v2280_v62 = vmul.f32 %v2279_v14, %v2274_v18  ;;  %v2275_v59 = vmul.f32 %v3388_v20, %v2259_v52 }
0x1749   :  { %v2281_v36 = vmul.f32 %v2279_v14, %v2275_v59  ;;  %v2286_v60 = vadd.f32 %v2285_v19, %v2280_v62 }
0x174b   :  { %v2287_v21 = vadd.f32 %v2285_v19, %v2281_v36 }
0x174d   :  { %v2288_v23 = vpack.c.bf16 %v2287_v21, %v2286_v60 }
0x174f   :  { %2811 = vmatmul.mubr.msk.bf16.vlgmr.msra.gmra.mrb[28].mxu1 %vm589_vm0, %v2288_v23 }
0x1822   :  { %v2393_v43 = vpop.f32.mrb[28].mxu1 }
0x1823   :  { %v2394_v47 = vadd.f32 %v2393_v43, %v2311_v40  ;;  %v2395_v48 = vpop.f32.mrb[29].mxu1 }
0x1824   :  { %v2396_v46 = vadd.f32 %v2395_v48, %v2315_v41  ;;  %v2397_v49 = vpop.f32.mrb[30].mxu1 }
0x1825   :  { %v2406_v51 = vmul.f32 0.70710677, %v2394_v47  ;;  %v2398_v52 = vadd.f32 %v2397_v49, %v2311_v40  ;;  %v2399_v56 = vpop.f32.mrb[31].mxu1  ;;  %v2402_v2 = vmul.f32 0.5, %v2394_v47 }
0x1826   :  { %v2407_v17 = vmul.f32 0.70710677, %v2396_v46  ;;  %v2400_v53 = vadd.f32 %v2399_v56, %v2315_v41  ;;  %v2403_v55 = vmul.f32 0.5, %v2396_v46 }
0x1827   :  { %3389 = verf.f32 %v2406_v51  ;;  %v2408_v54 = vmul.f32 0.70710677, %v2398_v52  ;;  %v2404_v13 = vmul.f32 0.5, %v2398_v52 }
0x1828   :  { %3391 = verf.f32 %v2407_v17  ;;  %v2409_v44 = vmul.f32 0.70710677, %v2400_v53  ;;  %v2405_v4 = vmul.f32 0.5, %v2400_v53 }
0x1829   :  { %3393 = verf.f32 %v2408_v54 }
0x182a   :  { %3395 = verf.f32 %v2409_v44 }
0x1831   :  { %v3390_v1 = vpop.eup %3389 }
0x1832   :  { %v3392_v58 = vpop.eup %3391  ;;  %v2414_v57 = vadd.f32 1.0, %v3390_v1 }
0x1833   :  { %v3394_v31 = vpop.eup %3393  ;;  %v2415_v63 = vadd.f32 1.0, %v3392_v58 }
0x1834   :  { %v3396_v0 = vpop.eup %3395  ;;  %v2416_v3 = vadd.f32 1.0, %v3394_v31  ;;  %v2418_v25 = vmul.f32 %v2414_v57, %v2402_v2 }
0x1835   :  { %v2417_v61 = vadd.f32 1.0, %v3396_v0  ;;  %v2419_v15 = vmul.f32 %v2415_v63, %v2403_v55 }
0x1836   :  { %v2420_v22 = vmul.f32 %v2416_v3, %v2404_v13 }
0x1837   :  { %v2421_v5 = vmul.f32 %v2417_v61, %v2405_v4 }
0x1838   :  { %v2422_v6 = vpack.c.bf16 %v2420_v22, %v2418_v25 }
0x1839   :  { %v2423_v9 = vpack.c.bf16 %v2421_v5, %v2419_v15 }
0x183b   :  { %2589 = vmatprep.mubr.bf16.mxu0 %v2423_v9 }
0x183c   :  { %2590 = vmatmul.mubr.bf16.vlgmr.msra.gmra.mrb[24].mxu0 %v2422_v6 }
0x190f   :  { %v3006_v11 = vpop.f32.mrb[24].mxu0 }
0x1910   :  { %v3007_v14 = vpop.f32.mrb[25].mxu0 }
0x1911   :  { %v3008_v16 = vadd.f32 %v3007_v14, %v3006_v11  ;;  %v3009_v18 = vpop.f32.mrb[26].mxu0 }
0x1912   :  { %v3010_v20 = vpop.f32.mrb[27].mxu0 }
0x1913   :  { %v2592_v62 = vadd.f32 %v3008_v16, %v2460_v12 }
0x1915   :  { %v2597_v59 = vadd.f32 %v2592_v62, %v4082_v37  ;;  %v2598_v37 = vld [vmem:[%s4208_s10] sm:$0x3] }
0x1916   :  { %v2620_v28 = vrot.slane %v2598_v37, %v3699_v45  ;;  %v2625_v32 = vrot.slane %v2598_v37, %v3709_v50 }
0x1917   :  { %v2600_v19 = vrot.slane %v2597_v59, 4 }
0x1919   :  { %v2603_v36 = vsel %vm2602_vm10, %v2597_v59, %v2600_v19 }
0x191a   :  { %v2604_v60 = vsel %vm593_vm1, %v2603_v36, 0.0 }
0x191b   :  { %2605 = vadd.xlane.f32.xlu0 %v2604_v60 }
0x19a8   :  { %v2606_v21 = vpop.xlane.xlu0 %2605 }
0x19a9   :  { %v2607_v23 = vmul.f32 0.015625, %v2606_v21 }
0x19ab   :  { %v2608_v24 = vsub.f32 %v2603_v36, %v2607_v23 }
0x19ad   :  { %v2609_v26 = vmul.f32 %v2608_v24, %v2608_v24 }
0x19af   :  { %v2610_v29 = vsel %vm593_vm1, %v2609_v26, 0.0 }
0x19b0   :  { %2611 = vadd.xlane.f32.xlu1 %v2610_v29 }
0x1a3d   :  { %v2612_v33 = vpop.xlane.xlu1 %2611 }
0x1a3e   :  { %v2613_v42 = vmul.f32 0.015625, %v2612_v33 }
0x1a40   :  { %v2614_v27 = vadd.f32 1e-06, %v2613_v42 }
0x1a42   :  { %3397 = vrsqrt.f32 %v2614_v27 }
0x1a4c   :  { %v3398_v30 = vpop.eup %3397 }
0x1a4d   :  { %v2616_v8 = vmul.f32 %v3398_v30, %v2608_v24 }
0x1a4f   :  { %v2621_v7 = vmul.f32 %v2620_v28, %v2616_v8 }
0x1a51   :  { %v2626_v10 = vadd.f32 %v2625_v32, %v2621_v7 }
0x1a53   :  { %2627 = vst.msk [vmem:[#allocation2] sm:$0x3] %vm593_vm1, %v2626_v10 }
0x1a54   :  { %3410 = shalt.err (!%p3407_p4)
}
0x1a55   :  { %s3411_s0 = scalar_lea.hbm %s4209_s11, 32 }
0x1a56   :  { %p3412_p5 = scmp.ne.s32.totalorder %s4209_s11, %s3411_s0  ;;  %p3415_p6 = scmp.lt.u32.totalorder %s3411_s0, %s4209_s11 }
0x1a58   :  { %p3417_p7 = pnand %p3415_p6, %p3412_p5 }
0x1a5a   :  { %3420 = shalt.err (!%p3417_p7)
}
0x1a5b   :  { %2637 = dma.vmem_to_hbm [thread:$0]  %s2635_s30, 32, %s4209_s11, [#allocation3]  }
0x1a5c   :  { %3421 = dma.done.wait [#allocation3], 32  }
0x1a5d   :  { %3422 = vsyncadd [#allocation3], 4294967264 }
0x1a5e   :  { %2641 = vsyncpa [#allocation3], 1 }

</bundles_post_ra>
